<compile_context>
chip_gen: v7x
topology: tpu7x:2x2x1
jax: 0.10.0
libtpu: 0.0.40
codegen_flags: <defaults>
</compile_context>

<pallas_src>
import functools

import jax
import jax.numpy as jnp
from jax.experimental import pallas as pl
from jax.experimental.pallas import tpu as pltpu


# ----------------------------------------------------------------------------
# small host-side helpers
# ----------------------------------------------------------------------------
def _round_up(n, m):
    return (n + m - 1) // m * m


def _vmem_limit_bytes():
    """Scoped-VMEM cap derived from the chip (headroom left for the compiler)."""
    cap = 64 * 1024 * 1024
    try:
        cap = int(pltpu.get_tpu_info().vmem_capacity_bytes)
    except Exception:
        pass
    # v5e/v6e (128 MiB) -> 100 MiB, v7x (64 MiB) -> 48 MiB.
    return max(32 * 1024 * 1024, min(cap - 16 * 1024 * 1024, 100 * 1024 * 1024))


def _pick_tile_rows(H, W, cin_p, cout_p, itemsize, budget):
    """Largest row-tile (TH divides H, TH*W lane-aligned) whose per-step
    working set fits the VMEM budget; prefers 512..8192-lane tiles so the
    pipeline (and v7x's second core) gets several steps per image."""
    cands = [th for th in range(1, H + 1)
             if H % th == 0 and ((th * W) % 128 == 0 or th == H)]

    def est(th):
        hwt = th * W
        return (2 * (cin_p * hwt + 2 * cin_p * W + 9 * hwt) * itemsize  # x/halo/mask (dbl buf)
                + 2 * (cout_p * hwt * itemsize + cout_p * 2 * 4)        # y + stats (dbl buf)
                + cin_p * (th + 2) * W * itemsize                       # ext scratch
                + cin_p * hwt * itemsize                                # one tap slab
                + cout_p * hwt * 4                                      # f32 accumulator
                + 2 * 9 * cout_p * cin_p * itemsize)                    # weights

    fitting = [th for th in cands if est(th) <= budget]
    if not fitting:
        return min(cands)
    sweet = [th for th in fitting if 512 <= th * W <= 8192]
    return max(sweet) if sweet else max(fitting)


def _border_masks(H, W, dtype):
    """(9, H*W) {0,1} masks of the zero-padding border per 3x3 tap (built once
    on the host; also covers the two roll-wrapped corner lanes)."""
    hw = H * W
    h = jnp.arange(hw, dtype=jnp.int32) // W
    w = jnp.arange(hw, dtype=jnp.int32) % W
    rows = []
    for kh in range(3):
        for kw in range(3):
            dh, dw = kh - 1, kw - 1
            valid = jnp.ones((hw,), jnp.bool_)
            if dh == -1:
                valid = valid & (h >= 1)
            if dh == 1:
                valid = valid & (h <= H - 2)
            if dw == -1:
                valid = valid & (w >= 1)
            if dw == 1:
                valid = valid & (w <= W - 2)
            rows.append(valid)
    return jnp.stack(rows).astype(dtype)                     # (9, H*W)


def _build_halos(x3, H, W, TH):
    """Per-row-tile halo rows: (N, T, 2, C, W) = (row above, row below), edge
    rows clamped (their contributions are border-masked in the kernel)."""
    N, C, _ = x3.shape
    T = H // TH
    xr = x3.reshape(N, C, H, W)
    rows = [[max(t * TH - 1, 0), min(t * TH + TH, H - 1)] for t in range(T)]
    g = xr[:, :, jnp.asarray(rows, dtype=jnp.int32), :]      # (N, C, T, 2, W)
    return jnp.transpose(g, (0, 2, 3, 1, 4))                 # (N, T, 2, C, W)


def _prep_w(w_oihw, cout_p, cin_p, dtype):
    """OIHW -> (9, Cout_p, Cin_p) (tap-major, channel-padded, pre-cast)."""
    O, I, _, _ = w_oihw.shape
    w = jnp.zeros((cout_p, cin_p, 3, 3), jnp.float32)
    w = w.at[:O, :I].set(w_oihw.astype(jnp.float32))
    return jnp.transpose(w, (2, 3, 0, 1)).reshape(9, cout_p, cin_p).astype(dtype)


def _pad_vec(v, n):
    v = v.astype(jnp.float32)
    return v if v.shape[0] == n else jnp.pad(v, (0, n - v.shape[0]))


# ----------------------------------------------------------------------------
# conv kernel: 3x3 conv (stride 1, pad 1) on one (C, TH*W) row tile as
# 9 accumulating matmuls, plus per-tile BatchNorm statistics.
# ----------------------------------------------------------------------------
def _make_conv_kernel(TH, W, pre_affine, mxu_dtype):
    HWt = TH * W

    def kernel(*refs):
        if pre_affine:
            (x_ref, halo_ref, w_ref, mask_ref, scale_ref, shift_ref,
             y_ref, stats_ref, ext_ref) = refs
        else:
            (x_ref, halo_ref, w_ref, mask_ref, y_ref, stats_ref, ext_ref) = refs

        # Fused BN(prev)+ReLU (f32 math), then cast to the MXU dtype BEFORE the
        # tap slabs are built (halves vreg/VMEM traffic of the slab work).
        if pre_affine:
            sc = scale_ref[...]                     # (C, 1) f32
            sh = shift_ref[...]

            def bn_relu(v):
                return jnp.maximum(v.astype(jnp.float32) * sc + sh,
                                   0.0).astype(mxu_dtype)

            xm = bn_relu(x_ref[...])                # (C, TH*W)
            h0 = bn_relu(halo_ref[0])               # (C, W) row above
            h1 = bn_relu(halo_ref[1])               # (C, W) row below
        else:
            xm = x_ref[...].astype(mxu_dtype)
            h0 = halo_ref[0].astype(mxu_dtype)
            h1 = halo_ref[1].astype(mxu_dtype)

        # Extended buffer on lanes: [row above | tile rows | row below].
        ext_ref[:, 0:W] = h0
        ext_ref[:, W:W + HWt] = xm
        ext_ref[:, W + HWt:] = h1
        xe = ext_ref[...]                           # (C, (TH+2)*W)

        mask = mask_ref[...]                        # (9, TH*W), {0,1}

        cout_p = y_ref.shape[0]
        acc = jnp.zeros((cout_p, HWt), jnp.float32)
        for kh in range(3):
            for kw in range(3):
                k = kh * 3 + kw
                off = kh * W + kw - 1               # lane offset of this tap in xe
                if 0 <= off <= 2 * W:
                    slab = xe[:, off:off + HWt]
                elif off < 0:                       # (kh,kw)=(0,0): off = -1
                    slab = pltpu.roll(xe[:, 0:HWt], shift=1, axis=1)
                else:                               # (kh,kw)=(2,2): off = 2W+1
                    slab = pltpu.roll(xe[:, 2 * W:2 * W + HWt],
                                      shift=HWt - 1, axis=1)
                if k != 4:                          # center tap needs no mask
                    slab = slab * mask[k:k + 1, :]
                # Accumulating per-tap matmul: no 9xC patch slab in VMEM,
                # MXU cycles identical to one fused K=9C contraction.
                acc = acc + jnp.dot(w_ref[k], slab,
                                    preferred_element_type=jnp.float32)

        # Per-tile BN statistics from the f32 accumulator (two direct stores,
        # no lane-axis concatenate).
        mean = jnp.mean(acc, axis=1, keepdims=True)            # (Cout_p, 1)
        cen = acc - mean
        stats_ref[:, 0:1] = mean
        stats_ref[:, 1:2] = jnp.sum(cen * cen, axis=1, keepdims=True)

        # Store the conv output in the (bf16) intermediate dtype.
        y_ref[...] = acc.astype(y_ref.dtype)

    return kernel


def _conv3x3(x, halos, wmat, masks, H, W, TH, mxu_dtype, vmem_limit,
             scale=None, shift=None):
    """x: (N, Cin_p, H*W); halos: (N, T, 2, Cin_p, W); wmat: (9, Cout_p, Cin_p).
    Returns (y, stats): y (N, Cout_p, H*W) in mxu_dtype and per-tile BN stats
    (N, T, Cout_p, 2) = (mean, centered sum of squares)."""
    N, cin_p, HW = x.shape
    cout_p = wmat.shape[1]
    T = H // TH
    HWt = TH * W
    pre = scale is not None
    kernel = _make_conv_kernel(TH, W, pre, mxu_dtype)

    in_specs = [
        pl.BlockSpec((None, cin_p, HWt), lambda n, t: (n, 0, t)),
        pl.BlockSpec((None, None, 2, cin_p, W), lambda n, t: (n, t, 0, 0, 0)),
        pl.BlockSpec((9, cout_p, cin_p), lambda n, t: (0, 0, 0)),
        pl.BlockSpec((9, HWt), lambda n, t: (0, t)),
    ]
    operands = [x, halos, wmat, masks]
    if pre:
        in_specs += [pl.BlockSpec((cin_p, 1), lambda n, t: (0, 0)),
                     pl.BlockSpec((cin_p, 1), lambda n, t: (0, 0))]
        operands += [scale, shift]

    # TODO(synk): if xprof shows exposed x-input DMA at small tiles, raise the
    # x spec's pipelining depth with pipeline_mode=pl.Buffered(3).
    return pl.pallas_call(
        kernel,
        grid=(N, T),
        in_specs=in_specs,
        out_specs=(pl.BlockSpec((None, cout_p, HWt), lambda n, t: (n, 0, t)),
                   pl.BlockSpec((None, None, cout_p, 2), lambda n, t: (n, t, 0, 0))),
        out_shape=(jax.ShapeDtypeStruct((N, cout_p, HW), mxu_dtype),
                   jax.ShapeDtypeStruct((N, T, cout_p, 2), jnp.float32)),
        scratch_shapes=[pltpu.VMEM((cin_p, (TH + 2) * W), mxu_dtype)],
        compiler_params=pltpu.CompilerParams(
            dimension_semantics=("parallel", "parallel"),
            vmem_limit_bytes=vmem_limit),
    )(*operands)


# ----------------------------------------------------------------------------
# final BN2 + ReLU (reads bf16 y2, writes f32, drops padded channels)
# ----------------------------------------------------------------------------
def _affine_relu(x, scale, shift, H, W, TH, vmem_limit):
    # TODO(synk): in a full network, fuse this pass into the consumer of the
    # DoubleConv output (or alias in place) to remove the HBM round trip.
    N, cp, HW = x.shape
    cout = scale.shape[0]
    T = H // TH
    HWt = TH * W

    def kernel(x_ref, sc_ref, sh_ref, o_ref):
        o_ref[...] = jnp.maximum(
            x_ref[0:cout, :].astype(jnp.float32) * sc_ref[...] + sh_ref[...],
            0.0)

    return pl.pallas_call(
        kernel,
        grid=(N, T),
        in_specs=[pl.BlockSpec((None, cp, HWt), lambda n, t: (n, 0, t)),
                  pl.BlockSpec((cout, 1), lambda n, t: (0, 0)),
                  pl.BlockSpec((cout, 1), lambda n, t: (0, 0))],
        out_specs=pl.BlockSpec((None, cout, HWt), lambda n, t: (n, 0, t)),
        out_shape=jax.ShapeDtypeStruct((N, cout, HW), jnp.float32),
        compiler_params=pltpu.CompilerParams(
            dimension_semantics=("parallel", "parallel"),
            vmem_limit_bytes=vmem_limit),
    )(x, scale, shift)


def _bn_scale_shift(stats, gamma, beta, hw_tile, eps):
    """Combine equal-sized per-tile (mean, M2) with the parallel-variance
    (Chan) formula; fold gamma/beta into per-channel (scale, shift).  Biased
    variance, i.e. BatchNorm training-mode statistics."""
    s = stats.reshape(-1, stats.shape[-2], 2)        # (num_tiles, C, 2)
    mean_i = s[:, :, 0]
    m2_i = s[:, :, 1]
    count = s.shape[0] * hw_tile
    mean = jnp.mean(mean_i, axis=0)                  # equal-sized tiles
    m2 = jnp.sum(m2_i, axis=0) + hw_tile * jnp.sum((mean_i - mean) ** 2, axis=0)
    var = m2 / count
    scale = gamma.astype(jnp.float32) * jax.lax.rsqrt(var + eps)
    shift = beta.astype(jnp.float32) - mean * scale
    return scale.reshape(-1, 1), shift.reshape(-1, 1)


# ----------------------------------------------------------------------------
# DoubleConv forward
# ----------------------------------------------------------------------------
@functools.partial(jax.jit, static_argnames=("eps", "compute_dtype", "tile_rows"))
def double_conv(x_nchw, w1_oihw, gamma1, beta1, w2_oihw, gamma2, beta2,
                eps=1e-5, compute_dtype=jnp.bfloat16, tile_rows=None):
    """DoubleConv forward.  x: (N, Cin, H, W) f32 -> (N, Cout, H, W) f32.
    compute_dtype: MXU-input / intermediate dtype (bf16 production, f32 test)."""
    N, Cin, H, W = x_nchw.shape
    Cout = w1_oihw.shape[0]
    HW = H * W
    cdt = jnp.dtype(compute_dtype)
    sub = 16 if cdt.itemsize == 2 else 8             # sublane multiple
    cin_p = _round_up(Cin, sub)
    cout_p = _round_up(Cout, sub)

    vmem_limit = _vmem_limit_bytes()
    if tile_rows is None:
        TH = _pick_tile_rows(H, W, max(cin_p, cout_p), cout_p, cdt.itemsize,
                             int(0.75 * vmem_limit))
    else:
        TH = int(tile_rows)
        if H % TH != 0 or ((TH * W) % 128 != 0 and TH != H):
            raise ValueError("tile_rows must divide H and give a 128-multiple "
                             "lane tile (or be H)")
    hw_tile = TH * W

    # NCHW with H*W flattened on lanes: pure reshape, channel pad, pre-cast.
    x = x_nchw.astype(cdt).reshape(N, Cin, HW)
    if cin_p > Cin:
        x = jnp.pad(x, ((0, 0), (0, cin_p - Cin), (0, 0)))

    w1m = _prep_w(w1_oihw, cout_p, cin_p, cdt)
    w2m = _prep_w(w2_oihw, cout_p, cout_p, cdt)
    masks = _border_masks(H, W, cdt)
    g1p, b1p = _pad_vec(gamma1, cout_p), _pad_vec(beta1, cout_p)
    g2p, b2p = _pad_vec(gamma2, cout_p), _pad_vec(beta2, cout_p)

    # conv1 (+ per-tile BN1 stats)
    y1, st1 = _conv3x3(x, _build_halos(x, H, W, TH), w1m, masks,
                       H, W, TH, cdt, vmem_limit)
    scale1, shift1 = _bn_scale_shift(st1, g1p, b1p, hw_tile, eps)
    # BN1 + ReLU fused into conv2 (+ per-tile BN2 stats)
    y2, st2 = _conv3x3(y1, _build_halos(y1, H, W, TH), w2m, masks,
                       H, W, TH, cdt, vmem_limit, scale=scale1, shift=shift1)
    scale2, shift2 = _bn_scale_shift(st2, g2p, b2p, hw_tile, eps)
    # BN2 + ReLU (drops the padded channels)
    out = _affine_relu(y2, scale2[:Cout], shift2[:Cout], H, W, TH, vmem_limit)
    return out.reshape(N, Cout, H, W)


# ----------------------------------------------------------------------------
# pure-JAX reference (PyTorch DoubleConv in training mode)
# ----------------------------------------------------------------------------
def _reference(x, w1, g1, b1, w2, g2, b2, eps=1e-5):
    def conv(inp, w):
        return jax.lax.conv_general_dilated(
            inp, w, window_strides=(1, 1), padding=((1, 1), (1, 1)),
            dimension_numbers=("NCHW", "OIHW", "NCHW"),
            precision=jax.lax.Precision.HIGHEST)

    def bn_relu(inp, g, b):
        mean = inp.mean(axis=(0, 2, 3), keepdims=True)
        var = inp.var(axis=(0, 2, 3), keepdims=True)      # biased, like BN train
        y = (inp - mean) / jnp.sqrt(var + eps)
        y = y * g.reshape(1, -1, 1, 1) + b.reshape(1, -1, 1, 1)
        return jnp.maximum(y, 0.0)

    y = bn_relu(conv(x, w1), g1, b1)
    return bn_relu(conv(y, w2), g2, b2)


if __name__ == "__main__":
    N, Cin, Cout, H, W = 2, 4, 8, 16, 16
    key = jax.random.PRNGKey(0)
    kx, kw1, kw2, kg1, kb1, kg2, kb2 = jax.random.split(key, 7)

    x = jax.random.normal(kx, (N, Cin, H, W), jnp.float32)
    w1 = jax.random.normal(kw1, (Cout, Cin, 3, 3), jnp.float32) * 0.2
    w2 = jax.random.normal(kw2, (Cout, Cout, 3, 3), jnp.float32) * 0.2
    gamma1 = 1.0 + 0.1 * jax.random.normal(kg1, (Cout,), jnp.float32)
    beta1 = 0.1 * jax.random.normal(kb1, (Cout,), jnp.float32)
    gamma2 = 1.0 + 0.1 * jax.random.normal(kg2, (Cout,), jnp.float32)
    beta2 = 0.1 * jax.random.normal(kb2, (Cout,), jnp.float32)

    ref = _reference(x, w1, gamma1, beta1, w2, gamma2, beta2)

    # 1) f32 MXU path, auto tiling (single row-tile at this size): structural
    #    correctness at tight tolerance.
    out = jax.block_until_ready(
        double_conv(x, w1, gamma1, beta1, w2, gamma2, beta2,
                    compute_dtype=jnp.float32))
    assert out.shape == (N, Cout, H, W)
    err = float(jnp.max(jnp.abs(out - ref)))
    assert err < 1e-3, f"f32/auto-tile mismatch: max abs err = {err}"

    # 2) f32 MXU path, forced 2 row-tiles per image: exercises the HW tiling
    #    (halo rows + per-tile BN-stat combine) at tight tolerance.
    out_t = jax.block_until_ready(
        double_conv(x, w1, gamma1, beta1, w2, gamma2, beta2,
                    compute_dtype=jnp.float32, tile_rows=8))
    err = float(jnp.max(jnp.abs(out_t - ref)))
    assert err < 1e-3, f"f32/tiled mismatch: max abs err = {err}"

    # 3) Production path: bf16 MXU inputs and bf16 intermediates (f32
    #    accumulation + f32 BN math).  Loose tolerance vs. the f32 reference:
    #    the difference is bf16 input quantization only.
    out_bf = jax.block_until_ready(
        double_conv(x, w1, gamma1, beta1, w2, gamma2, beta2, tile_rows=8))
    err = float(jnp.max(jnp.abs(out_bf - ref)))
    assert err < 1e-1, f"bf16 mismatch vs f32 reference: max abs err = {err}"

    print("KERNEL_OK")
</pallas_src>

<mosaic_0001>
module attributes {stable_mosaic.version = 11 : i64} {
  func.func @kernel(%arg0: i32, %arg1: i32, %arg2: memref<1x8x256xf32, #tpu.memory_space<vmem>>, %arg3: memref<1x1x2x8x16xf32, #tpu.memory_space<vmem>>, %arg4: memref<9x8x8xf32, #tpu.memory_space<vmem>>, %arg5: memref<9x256xf32, #tpu.memory_space<vmem>>, %arg6: memref<1x8x256xf32, #tpu.memory_space<vmem>>, %arg7: memref<1x1x8x2xf32, #tpu.memory_space<vmem>>, %arg8: memref<8x288xf32, #tpu.memory_space<vmem>>) attributes {dimension_semantics = [#tpu.dimension_semantics<parallel>, #tpu.dimension_semantics<parallel>], iteration_bounds = array<i64: 2, 1>, scalar_prefetch = 0 : i64, scratch_operands = 1 : i64, tpu.core_type = #tpu.core_type<tc>, window_params = [{transform_indices = @transform_0, window_bounds = array<i64: 1, 8, 256>}, {transform_indices = @transform_1, window_bounds = array<i64: 1, 1, 2, 8, 16>}, {pipeline_mode = #tpu.pipeline_mode<synchronous>, transform_indices = @transform_2, window_bounds = array<i64: 9, 8, 8>}, {transform_indices = @transform_3, window_bounds = array<i64: 9, 256>}, {transform_indices = @transform_4, window_bounds = array<i64: 1, 8, 256>}, {transform_indices = @transform_5, window_bounds = array<i64: 1, 1, 8, 2>}]} {
    %c0 = arith.constant 0 : index
    %c0_0 = arith.constant 0 : index
    %c0_1 = arith.constant 0 : index
    %0 = vector.load %arg2[%c0, %c0_0, %c0_1] : memref<1x8x256xf32, #tpu.memory_space<vmem>>, vector<1x8x256xf32>
    %1 = vector.shape_cast %0 : vector<1x8x256xf32> to vector<8x256xf32>
    %c0_2 = arith.constant 0 : index
    %c0_3 = arith.constant 0 : index
    %c0_4 = arith.constant 0 : index
    %c0_5 = arith.constant 0 : index
    %c0_6 = arith.constant 0 : index
    %2 = vector.load %arg3[%c0_2, %c0_3, %c0_4, %c0_5, %c0_6] : memref<1x1x2x8x16xf32, #tpu.memory_space<vmem>>, vector<1x1x1x8x16xf32>
    %3 = vector.shape_cast %2 : vector<1x1x1x8x16xf32> to vector<8x16xf32>
    %c0_7 = arith.constant 0 : index
    %c0_8 = arith.constant 0 : index
    %c1 = arith.constant 1 : index
    %c0_9 = arith.constant 0 : index
    %c0_10 = arith.constant 0 : index
    %4 = vector.load %arg3[%c0_7, %c0_8, %c1, %c0_9, %c0_10] : memref<1x1x2x8x16xf32, #tpu.memory_space<vmem>>, vector<1x1x1x8x16xf32>
    %5 = vector.shape_cast %4 : vector<1x1x1x8x16xf32> to vector<8x16xf32>
    %c0_11 = arith.constant 0 : index
    %c0_12 = arith.constant 0 : index
    %6 = vector.load %arg8[%c0_11, %c0_12] : memref<8x288xf32, #tpu.memory_space<vmem>>, vector<8x16xf32>
    tpu.vector_store %arg8[%c0_11, %c0_12], %3 {strides = array<i32>} : memref<8x288xf32, #tpu.memory_space<vmem>>, vector<8x16xf32>,
    %c0_13 = arith.constant 0 : index
    %c16 = arith.constant 16 : index
    %7 = vector.load %arg8[%c0_13, %c16] : memref<8x288xf32, #tpu.memory_space<vmem>>, vector<8x256xf32>
    tpu.vector_store %arg8[%c0_13, %c16], %1 {strides = array<i32>} : memref<8x288xf32, #tpu.memory_space<vmem>>, vector<8x256xf32>,
    %c0_14 = arith.constant 0 : index
    %c272 = arith.constant 272 : index
    %8 = vector.load %arg8[%c0_14, %c272] : memref<8x288xf32, #tpu.memory_space<vmem>>, vector<8x16xf32>
    tpu.vector_store %arg8[%c0_14, %c272], %5 {strides = array<i32>} : memref<8x288xf32, #tpu.memory_space<vmem>>, vector<8x16xf32>,
    %c0_15 = arith.constant 0 : index
    %c0_16 = arith.constant 0 : index
    %9 = vector.load %arg8[%c0_15, %c0_16] : memref<8x288xf32, #tpu.memory_space<vmem>>, vector<8x288xf32>
    %c0_17 = arith.constant 0 : index
    %c0_18 = arith.constant 0 : index
    %10 = vector.load %arg5[%c0_17, %c0_18] : memref<9x256xf32, #tpu.memory_space<vmem>>, vector<9x256xf32>
    %cst = arith.constant 0.000000e+00 : f32
    %11 = vector.broadcast %cst : f32 to vector<8x256xf32>
    %12 = vector.extract_strided_slice %9 {offsets = [0, 0], sizes = [8, 256], strides = [1, 1]} : vector<8x288xf32> to vector<8x256xf32>
    %c1_i32 = arith.constant 1 : i32
    %13 = tpu.dynamic_rotate %12 by %c1_i32 dim 1 : vector<8x256xf32>, i32 -> vector<8x256xf32>
    %14 = vector.extract_strided_slice %10 {offsets = [0, 0], sizes = [1, 256], strides = [1, 1]} : vector<9x256xf32> to vector<1x256xf32>
    %15 = vector.broadcast %14 : vector<1x256xf32> to vector<8x256xf32>
    %16 = arith.mulf %13, %15 : vector<8x256xf32>
    %c0_19 = arith.constant 0 : index
    %c0_20 = arith.constant 0 : index
    %c0_21 = arith.constant 0 : index
    %17 = vector.load %arg4[%c0_19, %c0_20, %c0_21] : memref<9x8x8xf32, #tpu.memory_space<vmem>>, vector<1x8x8xf32>
    %18 = vector.shape_cast %17 : vector<1x8x8xf32> to vector<8x8xf32>
    %cst_22 = arith.constant dense<0.000000e+00> : vector<8x256xf32>
    %19 = tpu.matmul %18, %16, %cst_22 {dimension_numbers = #tpu.dot_dimension_numbers<[1], [0], [0], [1], [0, 0, 1, 1], [], []>} : vector<8x8xf32>, vector<8x256xf32>, vector<8x256xf32> -> vector<8x256xf32>
    %20 = arith.addf %11, %19 : vector<8x256xf32>
    %21 = vector.extract_strided_slice %9 {offsets = [0, 0], sizes = [8, 256], strides = [1, 1]} : vector<8x288xf32> to vector<8x256xf32>
    %22 = vector.extract_strided_slice %10 {offsets = [1, 0], sizes = [1, 256], strides = [1, 1]} : vector<9x256xf32> to vector<1x256xf32>
    %23 = vector.broadcast %22 : vector<1x256xf32> to vector<8x256xf32>
    %24 = arith.mulf %21, %23 : vector<8x256xf32>
    %c1_23 = arith.constant 1 : index
    %c0_24 = arith.constant 0 : index
    %c0_25 = arith.constant 0 : index
    %25 = vector.load %arg4[%c1_23, %c0_24, %c0_25] : memref<9x8x8xf32, #tpu.memory_space<vmem>>, vector<1x8x8xf32>
    %26 = vector.shape_cast %25 : vector<1x8x8xf32> to vector<8x8xf32>
    %cst_26 = arith.constant dense<0.000000e+00> : vector<8x256xf32>
    %27 = tpu.matmul %26, %24, %cst_26 {dimension_numbers = #tpu.dot_dimension_numbers<[1], [0], [0], [1], [0, 0, 1, 1], [], []>} : vector<8x8xf32>, vector<8x256xf32>, vector<8x256xf32> -> vector<8x256xf32>
    %28 = arith.addf %20, %27 : vector<8x256xf32>
    %29 = vector.extract_strided_slice %9 {offsets = [0, 1], sizes = [8, 256], strides = [1, 1]} : vector<8x288xf32> to vector<8x256xf32>
    %30 = vector.extract_strided_slice %10 {offsets = [2, 0], sizes = [1, 256], strides = [1, 1]} : vector<9x256xf32> to vector<1x256xf32>
    %31 = vector.broadcast %30 : vector<1x256xf32> to vector<8x256xf32>
    %32 = arith.mulf %29, %31 : vector<8x256xf32>
    %c2 = arith.constant 2 : index
    %c0_27 = arith.constant 0 : index
    %c0_28 = arith.constant 0 : index
    %33 = vector.load %arg4[%c2, %c0_27, %c0_28] : memref<9x8x8xf32, #tpu.memory_space<vmem>>, vector<1x8x8xf32>
    %34 = vector.shape_cast %33 : vector<1x8x8xf32> to vector<8x8xf32>
    %cst_29 = arith.constant dense<0.000000e+00> : vector<8x256xf32>
    %35 = tpu.matmul %34, %32, %cst_29 {dimension_numbers = #tpu.dot_dimension_numbers<[1], [0], [0], [1], [0, 0, 1, 1], [], []>} : vector<8x8xf32>, vector<8x256xf32>, vector<8x256xf32> -> vector<8x256xf32>
    %36 = arith.addf %28, %35 : vector<8x256xf32>
    %37 = vector.extract_strided_slice %9 {offsets = [0, 15], sizes = [8, 256], strides = [1, 1]} : vector<8x288xf32> to vector<8x256xf32>
    %38 = vector.extract_strided_slice %10 {offsets = [3, 0], sizes = [1, 256], strides = [1, 1]} : vector<9x256xf32> to vector<1x256xf32>
    %39 = vector.broadcast %38 : vector<1x256xf32> to vector<8x256xf32>
    %40 = arith.mulf %37, %39 : vector<8x256xf32>
    %c3 = arith.constant 3 : index
    %c0_30 = arith.constant 0 : index
    %c0_31 = arith.constant 0 : index
    %41 = vector.load %arg4[%c3, %c0_30, %c0_31] : memref<9x8x8xf32, #tpu.memory_space<vmem>>, vector<1x8x8xf32>
    %42 = vector.shape_cast %41 : vector<1x8x8xf32> to vector<8x8xf32>
    %cst_32 = arith.constant dense<0.000000e+00> : vector<8x256xf32>
    %43 = tpu.matmul %42, %40, %cst_32 {dimension_numbers = #tpu.dot_dimension_numbers<[1], [0], [0], [1], [0, 0, 1, 1], [], []>} : vector<8x8xf32>, vector<8x256xf32>, vector<8x256xf32> -> vector<8x256xf32>
    %44 = arith.addf %36, %43 : vector<8x256xf32>
    %45 = vector.extract_strided_slice %9 {offsets = [0, 16], sizes = [8, 256], strides = [1, 1]} : vector<8x288xf32> to vector<8x256xf32>
    %c4 = arith.constant 4 : index
    %c0_33 = arith.constant 0 : index
    %c0_34 = arith.constant 0 : index
    %46 = vector.load %arg4[%c4, %c0_33, %c0_34] : memref<9x8x8xf32, #tpu.memory_space<vmem>>, vector<1x8x8xf32>
    %47 = vector.shape_cast %46 : vector<1x8x8xf32> to vector<8x8xf32>
    %cst_35 = arith.constant dense<0.000000e+00> : vector<8x256xf32>
    %48 = tpu.matmul %47, %45, %cst_35 {dimension_numbers = #tpu.dot_dimension_numbers<[1], [0], [0], [1], [0, 0, 1, 1], [], []>} : vector<8x8xf32>, vector<8x256xf32>, vector<8x256xf32> -> vector<8x256xf32>
    %49 = arith.addf %44, %48 : vector<8x256xf32>
    %50 = vector.extract_strided_slice %9 {offsets = [0, 17], sizes = [8, 256], strides = [1, 1]} : vector<8x288xf32> to vector<8x256xf32>
    %51 = vector.extract_strided_slice %10 {offsets = [5, 0], sizes = [1, 256], strides = [1, 1]} : vector<9x256xf32> to vector<1x256xf32>
    %52 = vector.broadcast %51 : vector<1x256xf32> to vector<8x256xf32>
    %53 = arith.mulf %50, %52 : vector<8x256xf32>
    %c5 = arith.constant 5 : index
    %c0_36 = arith.constant 0 : index
    %c0_37 = arith.constant 0 : index
    %54 = vector.load %arg4[%c5, %c0_36, %c0_37] : memref<9x8x8xf32, #tpu.memory_space<vmem>>, vector<1x8x8xf32>
    %55 = vector.shape_cast %54 : vector<1x8x8xf32> to vector<8x8xf32>
    %cst_38 = arith.constant dense<0.000000e+00> : vector<8x256xf32>
    %56 = tpu.matmul %55, %53, %cst_38 {dimension_numbers = #tpu.dot_dimension_numbers<[1], [0], [0], [1], [0, 0, 1, 1], [], []>} : vector<8x8xf32>, vector<8x256xf32>, vector<8x256xf32> -> vector<8x256xf32>
    %57 = arith.addf %49, %56 : vector<8x256xf32>
    %58 = vector.extract_strided_slice %9 {offsets = [0, 31], sizes = [8, 256], strides = [1, 1]} : vector<8x288xf32> to vector<8x256xf32>
    %59 = vector.extract_strided_slice %10 {offsets = [6, 0], sizes = [1, 256], strides = [1, 1]} : vector<9x256xf32> to vector<1x256xf32>
    %60 = vector.broadcast %59 : vector<1x256xf32> to vector<8x256xf32>
    %61 = arith.mulf %58, %60 : vector<8x256xf32>
    %c6 = arith.constant 6 : index
    %c0_39 = arith.constant 0 : index
    %c0_40 = arith.constant 0 : index
    %62 = vector.load %arg4[%c6, %c0_39, %c0_40] : memref<9x8x8xf32, #tpu.memory_space<vmem>>, vector<1x8x8xf32>
    %63 = vector.shape_cast %62 : vector<1x8x8xf32> to vector<8x8xf32>
    %cst_41 = arith.constant dense<0.000000e+00> : vector<8x256xf32>
    %64 = tpu.matmul %63, %61, %cst_41 {dimension_numbers = #tpu.dot_dimension_numbers<[1], [0], [0], [1], [0, 0, 1, 1], [], []>} : vector<8x8xf32>, vector<8x256xf32>, vector<8x256xf32> -> vector<8x256xf32>
    %65 = arith.addf %57, %64 : vector<8x256xf32>
    %66 = vector.extract_strided_slice %9 {offsets = [0, 32], sizes = [8, 256], strides = [1, 1]} : vector<8x288xf32> to vector<8x256xf32>
    %67 = vector.extract_strided_slice %10 {offsets = [7, 0], sizes = [1, 256], strides = [1, 1]} : vector<9x256xf32> to vector<1x256xf32>
    %68 = vector.broadcast %67 : vector<1x256xf32> to vector<8x256xf32>
    %69 = arith.mulf %66, %68 : vector<8x256xf32>
    %c7 = arith.constant 7 : index
    %c0_42 = arith.constant 0 : index
    %c0_43 = arith.constant 0 : index
    %70 = vector.load %arg4[%c7, %c0_42, %c0_43] : memref<9x8x8xf32, #tpu.memory_space<vmem>>, vector<1x8x8xf32>
    %71 = vector.shape_cast %70 : vector<1x8x8xf32> to vector<8x8xf32>
    %cst_44 = arith.constant dense<0.000000e+00> : vector<8x256xf32>
    %72 = tpu.matmul %71, %69, %cst_44 {dimension_numbers = #tpu.dot_dimension_numbers<[1], [0], [0], [1], [0, 0, 1, 1], [], []>} : vector<8x8xf32>, vector<8x256xf32>, vector<8x256xf32> -> vector<8x256xf32>
    %73 = arith.addf %65, %72 : vector<8x256xf32>
    %74 = vector.extract_strided_slice %9 {offsets = [0, 32], sizes = [8, 256], strides = [1, 1]} : vector<8x288xf32> to vector<8x256xf32>
    %c255_i32 = arith.constant 255 : i32
    %75 = tpu.dynamic_rotate %74 by %c255_i32 dim 1 : vector<8x256xf32>, i32 -> vector<8x256xf32>
    %76 = vector.extract_strided_slice %10 {offsets = [8, 0], sizes = [1, 256], strides = [1, 1]} : vector<9x256xf32> to vector<1x256xf32>
    %77 = vector.broadcast %76 : vector<1x256xf32> to vector<8x256xf32>
    %78 = arith.mulf %75, %77 : vector<8x256xf32>
    %c8 = arith.constant 8 : index
    %c0_45 = arith.constant 0 : index
    %c0_46 = arith.constant 0 : index
    %79 = vector.load %arg4[%c8, %c0_45, %c0_46] : memref<9x8x8xf32, #tpu.memory_space<vmem>>, vector<1x8x8xf32>
    %80 = vector.shape_cast %79 : vector<1x8x8xf32> to vector<8x8xf32>
    %cst_47 = arith.constant dense<0.000000e+00> : vector<8x256xf32>
    %81 = tpu.matmul %80, %78, %cst_47 {dimension_numbers = #tpu.dot_dimension_numbers<[1], [0], [0], [1], [0, 0, 1, 1], [], []>} : vector<8x8xf32>, vector<8x256xf32>, vector<8x256xf32> -> vector<8x256xf32>
    %82 = arith.addf %73, %81 : vector<8x256xf32>
    %cst_48 = arith.constant dense<0.000000e+00> : vector<8xf32>
    %83 = vector.multi_reduction <add>, %82, %cst_48 [1] : vector<8x256xf32> to vector<8xf32>
    %84 = vector.shape_cast %83 : vector<8xf32> to vector<8x1xf32>
    %cst_49 = arith.constant 2.560000e+02 : f32
    %85 = vector.broadcast %cst_49 : f32 to vector<8x1xf32>
    %86 = arith.divf %84, %85 : vector<8x1xf32>
    %87 = vector.broadcast %86 : vector<8x1xf32> to vector<8x256xf32>
    %88 = arith.subf %82, %87 : vector<8x256xf32>
    %c0_50 = arith.constant 0 : index
    %c0_51 = arith.constant 0 : index
    %c0_52 = arith.constant 0 : index
    %c0_53 = arith.constant 0 : index
    %89 = vector.load %arg7[%c0_50, %c0_51, %c0_52, %c0_53] : memref<1x1x8x2xf32, #tpu.memory_space<vmem>>, vector<1x1x8x1xf32>
    %90 = vector.shape_cast %89 : vector<1x1x8x1xf32> to vector<8x1xf32>
    %91 = vector.shape_cast %86 : vector<8x1xf32> to vector<1x1x8x1xf32>
    tpu.vector_store %arg7[%c0_50, %c0_51, %c0_52, %c0_53], %91 {strides = array<i32>} : memref<1x1x8x2xf32, #tpu.memory_space<vmem>>, vector<1x1x8x1xf32>,
    %92 = arith.mulf %88, %88 : vector<8x256xf32>
    %cst_54 = arith.constant dense<0.000000e+00> : vector<8xf32>
    %93 = vector.multi_reduction <add>, %92, %cst_54 [1] : vector<8x256xf32> to vector<8xf32>
    %94 = vector.shape_cast %93 : vector<8xf32> to vector<8x1xf32>
    %c0_55 = arith.constant 0 : index
    %c0_56 = arith.constant 0 : index
    %c0_57 = arith.constant 0 : index
    %c1_58 = arith.constant 1 : index
    %95 = vector.load %arg7[%c0_55, %c0_56, %c0_57, %c1_58] : memref<1x1x8x2xf32, #tpu.memory_space<vmem>>, vector<1x1x8x1xf32>
    %96 = vector.shape_cast %95 : vector<1x1x8x1xf32> to vector<8x1xf32>
    %97 = vector.shape_cast %94 : vector<8x1xf32> to vector<1x1x8x1xf32>
    tpu.vector_store %arg7[%c0_55, %c0_56, %c0_57, %c1_58], %97 {strides = array<i32>} : memref<1x1x8x2xf32, #tpu.memory_space<vmem>>, vector<1x1x8x1xf32>,
    %c0_59 = arith.constant 0 : index
    %c0_60 = arith.constant 0 : index
    %c0_61 = arith.constant 0 : index
    %98 = vector.load %arg6[%c0_59, %c0_60, %c0_61] : memref<1x8x256xf32, #tpu.memory_space<vmem>>, vector<1x8x256xf32>
    %99 = vector.shape_cast %98 : vector<1x8x256xf32> to vector<8x256xf32>
    %100 = vector.shape_cast %82 : vector<8x256xf32> to vector<1x8x256xf32>
    tpu.vector_store %arg6[%c0_59, %c0_60, %c0_61], %100 {strides = array<i32>} : memref<1x8x256xf32, #tpu.memory_space<vmem>>, vector<1x8x256xf32>,
    return
  }
  func.func @transform_0(%arg0: i32, %arg1: i32) -> (i32, i32, i32) {
    %c0_i32 = arith.constant 0 : i32
    %c0_i32_0 = arith.constant 0 : i32
    return %arg0, %c0_i32, %arg1 : i32, i32, i32
  }
  func.func @transform_1(%arg0: i32, %arg1: i32) -> (i32, i32, i32, i32, i32) {
    %c0_i32 = arith.constant 0 : i32
    %c0_i32_0 = arith.constant 0 : i32
    %c0_i32_1 = arith.constant 0 : i32
    %c0_i32_2 = arith.constant 0 : i32
    return %arg0, %arg1, %c0_i32, %c0_i32_0, %c0_i32_1 : i32, i32, i32, i32, i32
  }
  func.func @transform_2(%arg0: i32, %arg1: i32) -> (i32, i32, i32) {
    %c0_i32 = arith.constant 0 : i32
    %c0_i32_0 = arith.constant 0 : i32
    %c0_i32_1 = arith.constant 0 : i32
    %c0_i32_2 = arith.constant 0 : i32
    return %c0_i32, %c0_i32_0, %c0_i32_1 : i32, i32, i32
  }
  func.func @transform_3(%arg0: i32, %arg1: i32) -> (i32, i32) {
    %c0_i32 = arith.constant 0 : i32
    %c0_i32_0 = arith.constant 0 : i32
    return %c0_i32, %arg1 : i32, i32
  }
  func.func @transform_4(%arg0: i32, %arg1: i32) -> (i32, i32, i32) {
    %c0_i32 = arith.constant 0 : i32
    %c0_i32_0 = arith.constant 0 : i32
    return %arg0, %c0_i32, %arg1 : i32, i32, i32
  }
  func.func @transform_5(%arg0: i32, %arg1: i32) -> (i32, i32, i32, i32) {
    %c0_i32 = arith.constant 0 : i32
    %c0_i32_0 = arith.constant 0 : i32
    %c0_i32_1 = arith.constant 0 : i32
    return %arg0, %arg1, %c0_i32, %c0_i32_0 : i32, i32, i32, i32
  }
}

module attributes {stable_mosaic.version = 11 : i64} {
  func.func @kernel(%arg0: i32, %arg1: i32, %arg2: memref<1x8x256xf32, #tpu.memory_space<vmem>>, %arg3: memref<8x1xf32, #tpu.memory_space<vmem>>, %arg4: memref<8x1xf32, #tpu.memory_space<vmem>>, %arg5: memref<1x8x256xf32, #tpu.memory_space<vmem>>) attributes {dimension_semantics = [#tpu.dimension_semantics<parallel>, #tpu.dimension_semantics<parallel>], iteration_bounds = array<i64: 2, 1>, scalar_prefetch = 0 : i64, scratch_operands = 0 : i64, tpu.core_type = #tpu.core_type<tc>, window_params = [{transform_indices = @transform_0, window_bounds = array<i64: 1, 8, 256>}, {pipeline_mode = #tpu.pipeline_mode<synchronous>, transform_indices = @transform_1, window_bounds = array<i64: 8, 1>}, {pipeline_mode = #tpu.pipeline_mode<synchronous>, transform_indices = @transform_2, window_bounds = array<i64: 8, 1>}, {transform_indices = @transform_3, window_bounds = array<i64: 1, 8, 256>}]} {
    %c0 = arith.constant 0 : index
    %c0_0 = arith.constant 0 : index
    %c0_1 = arith.constant 0 : index
    %0 = vector.load %arg2[%c0, %c0_0, %c0_1] : memref<1x8x256xf32, #tpu.memory_space<vmem>>, vector<1x8x256xf32>
    %1 = vector.shape_cast %0 : vector<1x8x256xf32> to vector<8x256xf32>
    %c0_2 = arith.constant 0 : index
    %c0_3 = arith.constant 0 : index
    %2 = vector.load %arg3[%c0_2, %c0_3] : memref<8x1xf32, #tpu.memory_space<vmem>>, vector<8x1xf32>
    %3 = vector.broadcast %2 : vector<8x1xf32> to vector<8x256xf32>
    %4 = arith.mulf %1, %3 : vector<8x256xf32>
    %c0_4 = arith.constant 0 : index
    %c0_5 = arith.constant 0 : index
    %5 = vector.load %arg4[%c0_4, %c0_5] : memref<8x1xf32, #tpu.memory_space<vmem>>, vector<8x1xf32>
    %6 = vector.broadcast %5 : vector<8x1xf32> to vector<8x256xf32>
    %7 = arith.addf %4, %6 : vector<8x256xf32>
    %cst = arith.constant 0.000000e+00 : f32
    %8 = vector.broadcast %cst : f32 to vector<8x256xf32>
    %9 = arith.maximumf %7, %8 : vector<8x256xf32>
    %c0_6 = arith.constant 0 : index
    %c0_7 = arith.constant 0 : index
    %c0_8 = arith.constant 0 : index
    %10 = vector.load %arg5[%c0_6, %c0_7, %c0_8] : memref<1x8x256xf32, #tpu.memory_space<vmem>>, vector<1x8x256xf32>
    %11 = vector.shape_cast %10 : vector<1x8x256xf32> to vector<8x256xf32>
    %12 = vector.shape_cast %9 : vector<8x256xf32> to vector<1x8x256xf32>
    tpu.vector_store %arg5[%c0_6, %c0_7, %c0_8], %12 {strides = array<i32>} : memref<1x8x256xf32, #tpu.memory_space<vmem>>, vector<1x8x256xf32>,
    return
  }
  func.func @transform_0(%arg0: i32, %arg1: i32) -> (i32, i32, i32) {
    %c0_i32 = arith.constant 0 : i32
    %c0_i32_0 = arith.constant 0 : i32
    return %arg0, %c0_i32, %arg1 : i32, i32, i32
  }
  func.func @transform_1(%arg0: i32, %arg1: i32) -> (i32, i32) {
    %c0_i32 = arith.constant 0 : i32
    %c0_i32_0 = arith.constant 0 : i32
    %c0_i32_1 = arith.constant 0 : i32
    return %c0_i32, %c0_i32_0 : i32, i32
  }
  func.func @transform_2(%arg0: i32, %arg1: i32) -> (i32, i32) {
    %c0_i32 = arith.constant 0 : i32
    %c0_i32_0 = arith.constant 0 : i32
    %c0_i32_1 = arith.constant 0 : i32
    return %c0_i32, %c0_i32_0 : i32, i32
  }
  func.func @transform_3(%arg0: i32, %arg1: i32) -> (i32, i32, i32) {
    %c0_i32 = arith.constant 0 : i32
    %c0_i32_0 = arith.constant 0 : i32
    return %arg0, %c0_i32, %arg1 : i32, i32, i32
  }
}

module attributes {stable_mosaic.version = 11 : i64} {
  func.func @kernel(%arg0: i32, %arg1: i32, %arg2: memref<1x8x256xf32, #tpu.memory_space<vmem>>, %arg3: memref<1x1x2x8x16xf32, #tpu.memory_space<vmem>>, %arg4: memref<9x8x8xf32, #tpu.memory_space<vmem>>, %arg5: memref<9x256xf32, #tpu.memory_space<vmem>>, %arg6: memref<8x1xf32, #tpu.memory_space<vmem>>, %arg7: memref<8x1xf32, #tpu.memory_space<vmem>>, %arg8: memref<1x8x256xf32, #tpu.memory_space<vmem>>, %arg9: memref<1x1x8x2xf32, #tpu.memory_space<vmem>>, %arg10: memref<8x288xf32, #tpu.memory_space<vmem>>) attributes {dimension_semantics = [#tpu.dimension_semantics<parallel>, #tpu.dimension_semantics<parallel>], iteration_bounds = array<i64: 2, 1>, scalar_prefetch = 0 : i64, scratch_operands = 1 : i64, tpu.core_type = #tpu.core_type<tc>, window_params = [{transform_indices = @transform_0, window_bounds = array<i64: 1, 8, 256>}, {transform_indices = @transform_1, window_bounds = array<i64: 1, 1, 2, 8, 16>}, {pipeline_mode = #tpu.pipeline_mode<synchronous>, transform_indices = @transform_2, window_bounds = array<i64: 9, 8, 8>}, {transform_indices = @transform_3, window_bounds = array<i64: 9, 256>}, {pipeline_mode = #tpu.pipeline_mode<synchronous>, transform_indices = @transform_4, window_bounds = array<i64: 8, 1>}, {pipeline_mode = #tpu.pipeline_mode<synchronous>, transform_indices = @transform_5, window_bounds = array<i64: 8, 1>}, {transform_indices = @transform_6, window_bounds = array<i64: 1, 8, 256>}, {transform_indices = @transform_7, window_bounds = array<i64: 1, 1, 8, 2>}]} {
    %c0 = arith.constant 0 : index
    %c0_0 = arith.constant 0 : index
    %0 = vector.load %arg6[%c0, %c0_0] : memref<8x1xf32, #tpu.memory_space<vmem>>, vector<8x1xf32>
    %c0_1 = arith.constant 0 : index
    %c0_2 = arith.constant 0 : index
    %1 = vector.load %arg7[%c0_1, %c0_2] : memref<8x1xf32, #tpu.memory_space<vmem>>, vector<8x1xf32>
    %c0_3 = arith.constant 0 : index
    %c0_4 = arith.constant 0 : index
    %c0_5 = arith.constant 0 : index
    %2 = vector.load %arg2[%c0_3, %c0_4, %c0_5] : memref<1x8x256xf32, #tpu.memory_space<vmem>>, vector<1x8x256xf32>
    %3 = vector.shape_cast %2 : vector<1x8x256xf32> to vector<8x256xf32>
    %4 = vector.broadcast %0 : vector<8x1xf32> to vector<8x256xf32>
    %5 = arith.mulf %3, %4 : vector<8x256xf32>
    %6 = vector.broadcast %1 : vector<8x1xf32> to vector<8x256xf32>
    %7 = arith.addf %5, %6 : vector<8x256xf32>
    %cst = arith.constant 0.000000e+00 : f32
    %8 = vector.broadcast %cst : f32 to vector<8x256xf32>
    %9 = arith.maximumf %7, %8 : vector<8x256xf32>
    %c0_6 = arith.constant 0 : index
    %c0_7 = arith.constant 0 : index
    %c0_8 = arith.constant 0 : index
    %c0_9 = arith.constant 0 : index
    %c0_10 = arith.constant 0 : index
    %10 = vector.load %arg3[%c0_6, %c0_7, %c0_8, %c0_9, %c0_10] : memref<1x1x2x8x16xf32, #tpu.memory_space<vmem>>, vector<1x1x1x8x16xf32>
    %11 = vector.shape_cast %10 : vector<1x1x1x8x16xf32> to vector<8x16xf32>
    %12 = vector.broadcast %0 : vector<8x1xf32> to vector<8x16xf32>
    %13 = arith.mulf %11, %12 : vector<8x16xf32>
    %14 = vector.broadcast %1 : vector<8x1xf32> to vector<8x16xf32>
    %15 = arith.addf %13, %14 : vector<8x16xf32>
    %cst_11 = arith.constant 0.000000e+00 : f32
    %16 = vector.broadcast %cst_11 : f32 to vector<8x16xf32>
    %17 = arith.maximumf %15, %16 : vector<8x16xf32>
    %c0_12 = arith.constant 0 : index
    %c0_13 = arith.constant 0 : index
    %c1 = arith.constant 1 : index
    %c0_14 = arith.constant 0 : index
    %c0_15 = arith.constant 0 : index
    %18 = vector.load %arg3[%c0_12, %c0_13, %c1, %c0_14, %c0_15] : memref<1x1x2x8x16xf32, #tpu.memory_space<vmem>>, vector<1x1x1x8x16xf32>
    %19 = vector.shape_cast %18 : vector<1x1x1x8x16xf32> to vector<8x16xf32>
    %20 = vector.broadcast %0 : vector<8x1xf32> to vector<8x16xf32>
    %21 = arith.mulf %19, %20 : vector<8x16xf32>
    %22 = vector.broadcast %1 : vector<8x1xf32> to vector<8x16xf32>
    %23 = arith.addf %21, %22 : vector<8x16xf32>
    %cst_16 = arith.constant 0.000000e+00 : f32
    %24 = vector.broadcast %cst_16 : f32 to vector<8x16xf32>
    %25 = arith.maximumf %23, %24 : vector<8x16xf32>
    %c0_17 = arith.constant 0 : index
    %c0_18 = arith.constant 0 : index
    %26 = vector.load %arg10[%c0_17, %c0_18] : memref<8x288xf32, #tpu.memory_space<vmem>>, vector<8x16xf32>
    tpu.vector_store %arg10[%c0_17, %c0_18], %17 {strides = array<i32>} : memref<8x288xf32, #tpu.memory_space<vmem>>, vector<8x16xf32>,
    %c0_19 = arith.constant 0 : index
    %c16 = arith.constant 16 : index
    %27 = vector.load %arg10[%c0_19, %c16] : memref<8x288xf32, #tpu.memory_space<vmem>>, vector<8x256xf32>
    tpu.vector_store %arg10[%c0_19, %c16], %9 {strides = array<i32>} : memref<8x288xf32, #tpu.memory_space<vmem>>, vector<8x256xf32>,
    %c0_20 = arith.constant 0 : index
    %c272 = arith.constant 272 : index
    %28 = vector.load %arg10[%c0_20, %c272] : memref<8x288xf32, #tpu.memory_space<vmem>>, vector<8x16xf32>
    tpu.vector_store %arg10[%c0_20, %c272], %25 {strides = array<i32>} : memref<8x288xf32, #tpu.memory_space<vmem>>, vector<8x16xf32>,
    %c0_21 = arith.constant 0 : index
    %c0_22 = arith.constant 0 : index
    %29 = vector.load %arg10[%c0_21, %c0_22] : memref<8x288xf32, #tpu.memory_space<vmem>>, vector<8x288xf32>
    %c0_23 = arith.constant 0 : index
    %c0_24 = arith.constant 0 : index
    %30 = vector.load %arg5[%c0_23, %c0_24] : memref<9x256xf32, #tpu.memory_space<vmem>>, vector<9x256xf32>
    %cst_25 = arith.constant 0.000000e+00 : f32
    %31 = vector.broadcast %cst_25 : f32 to vector<8x256xf32>
    %32 = vector.extract_strided_slice %29 {offsets = [0, 0], sizes = [8, 256], strides = [1, 1]} : vector<8x288xf32> to vector<8x256xf32>
    %c1_i32 = arith.constant 1 : i32
    %33 = tpu.dynamic_rotate %32 by %c1_i32 dim 1 : vector<8x256xf32>, i32 -> vector<8x256xf32>
    %34 = vector.extract_strided_slice %30 {offsets = [0, 0], sizes = [1, 256], strides = [1, 1]} : vector<9x256xf32> to vector<1x256xf32>
    %35 = vector.broadcast %34 : vector<1x256xf32> to vector<8x256xf32>
    %36 = arith.mulf %33, %35 : vector<8x256xf32>
    %c0_26 = arith.constant 0 : index
    %c0_27 = arith.constant 0 : index
    %c0_28 = arith.constant 0 : index
    %37 = vector.load %arg4[%c0_26, %c0_27, %c0_28] : memref<9x8x8xf32, #tpu.memory_space<vmem>>, vector<1x8x8xf32>
    %38 = vector.shape_cast %37 : vector<1x8x8xf32> to vector<8x8xf32>
    %cst_29 = arith.constant dense<0.000000e+00> : vector<8x256xf32>
    %39 = tpu.matmul %38, %36, %cst_29 {dimension_numbers = #tpu.dot_dimension_numbers<[1], [0], [0], [1], [0, 0, 1, 1], [], []>} : vector<8x8xf32>, vector<8x256xf32>, vector<8x256xf32> -> vector<8x256xf32>
    %40 = arith.addf %31, %39 : vector<8x256xf32>
    %41 = vector.extract_strided_slice %29 {offsets = [0, 0], sizes = [8, 256], strides = [1, 1]} : vector<8x288xf32> to vector<8x256xf32>
    %42 = vector.extract_strided_slice %30 {offsets = [1, 0], sizes = [1, 256], strides = [1, 1]} : vector<9x256xf32> to vector<1x256xf32>
    %43 = vector.broadcast %42 : vector<1x256xf32> to vector<8x256xf32>
    %44 = arith.mulf %41, %43 : vector<8x256xf32>
    %c1_30 = arith.constant 1 : index
    %c0_31 = arith.constant 0 : index
    %c0_32 = arith.constant 0 : index
    %45 = vector.load %arg4[%c1_30, %c0_31, %c0_32] : memref<9x8x8xf32, #tpu.memory_space<vmem>>, vector<1x8x8xf32>
    %46 = vector.shape_cast %45 : vector<1x8x8xf32> to vector<8x8xf32>
    %cst_33 = arith.constant dense<0.000000e+00> : vector<8x256xf32>
    %47 = tpu.matmul %46, %44, %cst_33 {dimension_numbers = #tpu.dot_dimension_numbers<[1], [0], [0], [1], [0, 0, 1, 1], [], []>} : vector<8x8xf32>, vector<8x256xf32>, vector<8x256xf32> -> vector<8x256xf32>
    %48 = arith.addf %40, %47 : vector<8x256xf32>
    %49 = vector.extract_strided_slice %29 {offsets = [0, 1], sizes = [8, 256], strides = [1, 1]} : vector<8x288xf32> to vector<8x256xf32>
    %50 = vector.extract_strided_slice %30 {offsets = [2, 0], sizes = [1, 256], strides = [1, 1]} : vector<9x256xf32> to vector<1x256xf32>
    %51 = vector.broadcast %50 : vector<1x256xf32> to vector<8x256xf32>
    %52 = arith.mulf %49, %51 : vector<8x256xf32>
    %c2 = arith.constant 2 : index
    %c0_34 = arith.constant 0 : index
    %c0_35 = arith.constant 0 : index
    %53 = vector.load %arg4[%c2, %c0_34, %c0_35] : memref<9x8x8xf32, #tpu.memory_space<vmem>>, vector<1x8x8xf32>
    %54 = vector.shape_cast %53 : vector<1x8x8xf32> to vector<8x8xf32>
    %cst_36 = arith.constant dense<0.000000e+00> : vector<8x256xf32>
    %55 = tpu.matmul %54, %52, %cst_36 {dimension_numbers = #tpu.dot_dimension_numbers<[1], [0], [0], [1], [0, 0, 1, 1], [], []>} : vector<8x8xf32>, vector<8x256xf32>, vector<8x256xf32> -> vector<8x256xf32>
    %56 = arith.addf %48, %55 : vector<8x256xf32>
    %57 = vector.extract_strided_slice %29 {offsets = [0, 15], sizes = [8, 256], strides = [1, 1]} : vector<8x288xf32> to vector<8x256xf32>
    %58 = vector.extract_strided_slice %30 {offsets = [3, 0], sizes = [1, 256], strides = [1, 1]} : vector<9x256xf32> to vector<1x256xf32>
    %59 = vector.broadcast %58 : vector<1x256xf32> to vector<8x256xf32>
    %60 = arith.mulf %57, %59 : vector<8x256xf32>
    %c3 = arith.constant 3 : index
    %c0_37 = arith.constant 0 : index
    %c0_38 = arith.constant 0 : index
    %61 = vector.load %arg4[%c3, %c0_37, %c0_38] : memref<9x8x8xf32, #tpu.memory_space<vmem>>, vector<1x8x8xf32>
    %62 = vector.shape_cast %61 : vector<1x8x8xf32> to vector<8x8xf32>
    %cst_39 = arith.constant dense<0.000000e+00> : vector<8x256xf32>
    %63 = tpu.matmul %62, %60, %cst_39 {dimension_numbers = #tpu.dot_dimension_numbers<[1], [0], [0], [1], [0, 0, 1, 1], [], []>} : vector<8x8xf32>, vector<8x256xf32>, vector<8x256xf32> -> vector<8x256xf32>
    %64 = arith.addf %56, %63 : vector<8x256xf32>
    %65 = vector.extract_strided_slice %29 {offsets = [0, 16], sizes = [8, 256], strides = [1, 1]} : vector<8x288xf32> to vector<8x256xf32>
    %c4 = arith.constant 4 : index
    %c0_40 = arith.constant 0 : index
    %c0_41 = arith.constant 0 : index
    %66 = vector.load %arg4[%c4, %c0_40, %c0_41] : memref<9x8x8xf32, #tpu.memory_space<vmem>>, vector<1x8x8xf32>
    %67 = vector.shape_cast %66 : vector<1x8x8xf32> to vector<8x8xf32>
    %cst_42 = arith.constant dense<0.000000e+00> : vector<8x256xf32>
    %68 = tpu.matmul %67, %65, %cst_42 {dimension_numbers = #tpu.dot_dimension_numbers<[1], [0], [0], [1], [0, 0, 1, 1], [], []>} : vector<8x8xf32>, vector<8x256xf32>, vector<8x256xf32> -> vector<8x256xf32>
    %69 = arith.addf %64, %68 : vector<8x256xf32>
    %70 = vector.extract_strided_slice %29 {offsets = [0, 17], sizes = [8, 256], strides = [1, 1]} : vector<8x288xf32> to vector<8x256xf32>
    %71 = vector.extract_strided_slice %30 {offsets = [5, 0], sizes = [1, 256], strides = [1, 1]} : vector<9x256xf32> to vector<1x256xf32>
    %72 = vector.broadcast %71 : vector<1x256xf32> to vector<8x256xf32>
    %73 = arith.mulf %70, %72 : vector<8x256xf32>
    %c5 = arith.constant 5 : index
    %c0_43 = arith.constant 0 : index
    %c0_44 = arith.constant 0 : index
    %74 = vector.load %arg4[%c5, %c0_43, %c0_44] : memref<9x8x8xf32, #tpu.memory_space<vmem>>, vector<1x8x8xf32>
    %75 = vector.shape_cast %74 : vector<1x8x8xf32> to vector<8x8xf32>
    %cst_45 = arith.constant dense<0.000000e+00> : vector<8x256xf32>
    %76 = tpu.matmul %75, %73, %cst_45 {dimension_numbers = #tpu.dot_dimension_numbers<[1], [0], [0], [1], [0, 0, 1, 1], [], []>} : vector<8x8xf32>, vector<8x256xf32>, vector<8x256xf32> -> vector<8x256xf32>
    %77 = arith.addf %69, %76 : vector<8x256xf32>
    %78 = vector.extract_strided_slice %29 {offsets = [0, 31], sizes = [8, 256], strides = [1, 1]} : vector<8x288xf32> to vector<8x256xf32>
    %79 = vector.extract_strided_slice %30 {offsets = [6, 0], sizes = [1, 256], strides = [1, 1]} : vector<9x256xf32> to vector<1x256xf32>
    %80 = vector.broadcast %79 : vector<1x256xf32> to vector<8x256xf32>
    %81 = arith.mulf %78, %80 : vector<8x256xf32>
    %c6 = arith.constant 6 : index
    %c0_46 = arith.constant 0 : index
    %c0_47 = arith.constant 0 : index
    %82 = vector.load %arg4[%c6, %c0_46, %c0_47] : memref<9x8x8xf32, #tpu.memory_space<vmem>>, vector<1x8x8xf32>
    %83 = vector.shape_cast %82 : vector<1x8x8xf32> to vector<8x8xf32>
    %cst_48 = arith.constant dense<0.000000e+00> : vector<8x256xf32>
    %84 = tpu.matmul %83, %81, %cst_48 {dimension_numbers = #tpu.dot_dimension_numbers<[1], [0], [0], [1], [0, 0, 1, 1], [], []>} : vector<8x8xf32>, vector<8x256xf32>, vector<8x256xf32> -> vector<8x256xf32>
    %85 = arith.addf %77, %84 : vector<8x256xf32>
    %86 = vector.extract_strided_slice %29 {offsets = [0, 32], sizes = [8, 256], strides = [1, 1]} : vector<8x288xf32> to vector<8x256xf32>
    %87 = vector.extract_strided_slice %30 {offsets = [7, 0], sizes = [1, 256], strides = [1, 1]} : vector<9x256xf32> to vector<1x256xf32>
    %88 = vector.broadcast %87 : vector<1x256xf32> to vector<8x256xf32>
    %89 = arith.mulf %86, %88 : vector<8x256xf32>
    %c7 = arith.constant 7 : index
    %c0_49 = arith.constant 0 : index
    %c0_50 = arith.constant 0 : index
    %90 = vector.load %arg4[%c7, %c0_49, %c0_50] : memref<9x8x8xf32, #tpu.memory_space<vmem>>, vector<1x8x8xf32>
    %91 = vector.shape_cast %90 : vector<1x8x8xf32> to vector<8x8xf32>
    %cst_51 = arith.constant dense<0.000000e+00> : vector<8x256xf32>
    %92 = tpu.matmul %91, %89, %cst_51 {dimension_numbers = #tpu.dot_dimension_numbers<[1], [0], [0], [1], [0, 0, 1, 1], [], []>} : vector<8x8xf32>, vector<8x256xf32>, vector<8x256xf32> -> vector<8x256xf32>
    %93 = arith.addf %85, %92 : vector<8x256xf32>
    %94 = vector.extract_strided_slice %29 {offsets = [0, 32], sizes = [8, 256], strides = [1, 1]} : vector<8x288xf32> to vector<8x256xf32>
    %c255_i32 = arith.constant 255 : i32
    %95 = tpu.dynamic_rotate %94 by %c255_i32 dim 1 : vector<8x256xf32>, i32 -> vector<8x256xf32>
    %96 = vector.extract_strided_slice %30 {offsets = [8, 0], sizes = [1, 256], strides = [1, 1]} : vector<9x256xf32> to vector<1x256xf32>
    %97 = vector.broadcast %96 : vector<1x256xf32> to vector<8x256xf32>
    %98 = arith.mulf %95, %97 : vector<8x256xf32>
    %c8 = arith.constant 8 : index
    %c0_52 = arith.constant 0 : index
    %c0_53 = arith.constant 0 : index
    %99 = vector.load %arg4[%c8, %c0_52, %c0_53] : memref<9x8x8xf32, #tpu.memory_space<vmem>>, vector<1x8x8xf32>
    %100 = vector.shape_cast %99 : vector<1x8x8xf32> to vector<8x8xf32>
    %cst_54 = arith.constant dense<0.000000e+00> : vector<8x256xf32>
    %101 = tpu.matmul %100, %98, %cst_54 {dimension_numbers = #tpu.dot_dimension_numbers<[1], [0], [0], [1], [0, 0, 1, 1], [], []>} : vector<8x8xf32>, vector<8x256xf32>, vector<8x256xf32> -> vector<8x256xf32>
    %102 = arith.addf %93, %101 : vector<8x256xf32>
    %cst_55 = arith.constant dense<0.000000e+00> : vector<8xf32>
    %103 = vector.multi_reduction <add>, %102, %cst_55 [1] : vector<8x256xf32> to vector<8xf32>
    %104 = vector.shape_cast %103 : vector<8xf32> to vector<8x1xf32>
    %cst_56 = arith.constant 2.560000e+02 : f32
    %105 = vector.broadcast %cst_56 : f32 to vector<8x1xf32>
    %106 = arith.divf %104, %105 : vector<8x1xf32>
    %107 = vector.broadcast %106 : vector<8x1xf32> to vector<8x256xf32>
    %108 = arith.subf %102, %107 : vector<8x256xf32>
    %c0_57 = arith.constant 0 : index
    %c0_58 = arith.constant 0 : index
    %c0_59 = arith.constant 0 : index
    %c0_60 = arith.constant 0 : index
    %109 = vector.load %arg9[%c0_57, %c0_58, %c0_59, %c0_60] : memref<1x1x8x2xf32, #tpu.memory_space<vmem>>, vector<1x1x8x1xf32>
    %110 = vector.shape_cast %109 : vector<1x1x8x1xf32> to vector<8x1xf32>
    %111 = vector.shape_cast %106 : vector<8x1xf32> to vector<1x1x8x1xf32>
    tpu.vector_store %arg9[%c0_57, %c0_58, %c0_59, %c0_60], %111 {strides = array<i32>} : memref<1x1x8x2xf32, #tpu.memory_space<vmem>>, vector<1x1x8x1xf32>,
    %112 = arith.mulf %108, %108 : vector<8x256xf32>
    %cst_61 = arith.constant dense<0.000000e+00> : vector<8xf32>
    %113 = vector.multi_reduction <add>, %112, %cst_61 [1] : vector<8x256xf32> to vector<8xf32>
    %114 = vector.shape_cast %113 : vector<8xf32> to vector<8x1xf32>
    %c0_62 = arith.constant 0 : index
    %c0_63 = arith.constant 0 : index
    %c0_64 = arith.constant 0 : index
    %c1_65 = arith.constant 1 : index
    %115 = vector.load %arg9[%c0_62, %c0_63, %c0_64, %c1_65] : memref<1x1x8x2xf32, #tpu.memory_space<vmem>>, vector<1x1x8x1xf32>
    %116 = vector.shape_cast %115 : vector<1x1x8x1xf32> to vector<8x1xf32>
    %117 = vector.shape_cast %114 : vector<8x1xf32> to vector<1x1x8x1xf32>
    tpu.vector_store %arg9[%c0_62, %c0_63, %c0_64, %c1_65], %117 {strides = array<i32>} : memref<1x1x8x2xf32, #tpu.memory_space<vmem>>, vector<1x1x8x1xf32>,
    %c0_66 = arith.constant 0 : index
    %c0_67 = arith.constant 0 : index
    %c0_68 = arith.constant 0 : index
    %118 = vector.load %arg8[%c0_66, %c0_67, %c0_68] : memref<1x8x256xf32, #tpu.memory_space<vmem>>, vector<1x8x256xf32>
    %119 = vector.shape_cast %118 : vector<1x8x256xf32> to vector<8x256xf32>
    %120 = vector.shape_cast %102 : vector<8x256xf32> to vector<1x8x256xf32>
    tpu.vector_store %arg8[%c0_66, %c0_67, %c0_68], %120 {strides = array<i32>} : memref<1x8x256xf32, #tpu.memory_space<vmem>>, vector<1x8x256xf32>,
    return
  }
  func.func @transform_0(%arg0: i32, %arg1: i32) -> (i32, i32, i32) {
    %c0_i32 = arith.constant 0 : i32
    %c0_i32_0 = arith.constant 0 : i32
    return %arg0, %c0_i32, %arg1 : i32, i32, i32
  }
  func.func @transform_1(%arg0: i32, %arg1: i32) -> (i32, i32, i32, i32, i32) {
    %c0_i32 = arith.constant 0 : i32
    %c0_i32_0 = arith.constant 0 : i32
    %c0_i32_1 = arith.constant 0 : i32
    %c0_i32_2 = arith.constant 0 : i32
    return %arg0, %arg1, %c0_i32, %c0_i32_0, %c0_i32_1 : i32, i32, i32, i32, i32
  }
  func.func @transform_2(%arg0: i32, %arg1: i32) -> (i32, i32, i32) {
    %c0_i32 = arith.constant 0 : i32
    %c0_i32_0 = arith.constant 0 : i32
    %c0_i32_1 = arith.constant 0 : i32
    %c0_i32_2 = arith.constant 0 : i32
    return %c0_i32, %c0_i32_0, %c0_i32_1 : i32, i32, i32
  }
  func.func @transform_3(%arg0: i32, %arg1: i32) -> (i32, i32) {
    %c0_i32 = arith.constant 0 : i32
    %c0_i32_0 = arith.constant 0 : i32
    return %c0_i32, %arg1 : i32, i32
  }
  func.func @transform_4(%arg0: i32, %arg1: i32) -> (i32, i32) {
    %c0_i32 = arith.constant 0 : i32
    %c0_i32_0 = arith.constant 0 : i32
    %c0_i32_1 = arith.constant 0 : i32
    return %c0_i32, %c0_i32_0 : i32, i32
  }
  func.func @transform_5(%arg0: i32, %arg1: i32) -> (i32, i32) {
    %c0_i32 = arith.constant 0 : i32
    %c0_i32_0 = arith.constant 0 : i32
    %c0_i32_1 = arith.constant 0 : i32
    return %c0_i32, %c0_i32_0 : i32, i32
  }
  func.func @transform_6(%arg0: i32, %arg1: i32) -> (i32, i32, i32) {
    %c0_i32 = arith.constant 0 : i32
    %c0_i32_0 = arith.constant 0 : i32
    return %arg0, %c0_i32, %arg1 : i32, i32, i32
  }
  func.func @transform_7(%arg0: i32, %arg1: i32) -> (i32, i32, i32, i32) {
    %c0_i32 = arith.constant 0 : i32
    %c0_i32_0 = arith.constant 0 : i32
    %c0_i32_1 = arith.constant 0 : i32
    return %arg0, %arg1, %c0_i32, %c0_i32_0 : i32, i32, i32, i32
  }
}

</mosaic_0001>

<bundles_post_ra>
// kernel: double_conv.5
= control target key start
LH: loop header
LB: loop body
LE: loop exit
PB: predicated region body
PF: predicated region fallthrough
CT: control target
= control target key end

     0   :  { %s403_s12 = smov 0   ;;  %s405_s13 = smov 0   ;;  %s442_s0 = inlined_call_operand.vmem [shape: f32[2,8,256], index: 0, kind: input, shape index: {}]   ;;  %s443_s1 = inlined_call_operand.vmem [shape: f32[8,1], index: 1, kind: input, shape index: {}]   ;;  %s444_s2 = inlined_call_operand.vmem [shape: f32[8,1], index: 2, kind: input, shape index: {}]   ;;  %s445_s3 = inlined_call_operand.vmem [shape: f32[2,8,256], index: 3, kind: output, shape index: {}]  }
   0x1   :  { %s407_s14 = smov 0  }
   0x2 LB: > { %s25_s15 = sadd.s32 1, %s376_s13  ;;  %p323_p0 = scmp.ge.s32.totalorder %s380_s14, 1  ;;  %s380_s14 = sphi %s407_s14, %s13_s14   ;;  %s376_s13 = sphi %s405_s13, %s447_s13   ;;  %s372_s12 = sphi %s403_s12, %s446_s12  }
   0x3   : > { %p27_p1 = scmp.ge.s32.totalorder %s25_s15, 2  ;;  %p158_p2 = scmp.lt.s32.totalorder %s380_s14, 3 }
   0x5   : > { %s449_s15 = smov (%p27_p1, %s25_s15), 0  ;;  %p159_p3 = pnand %p323_p0, %p158_p2 }
   0x6   : > { %v212_v0 = vld [vmem:[%s443_s1] sm:$0xff] (!%p159_p3)  ;;  %v382_v1 = vmov (!%p159_p3), 0   ;;  %p191_p4 = scmp.lt.s32.totalorder (!%p159_p3), %s372_s12, 1 }
   0x7   : > { %162 = sbr.rel (%p159_p3) target bundleno = 145 (0x91), region = 32  ;;  %357 = vset.pattern.permute.xlu0 (!%p159_p3), %v382_v1  ;;  %v220_v2 = vld [vmem:[%s444_s2] sm:$0xff] (!%p159_p3) }
   0x8   : > { %215 = vperm.xlu0 (!%p159_p3), %357, %v212_v0  }
   0xc   : > { %223 = vperm.xlu0 (!%p159_p3), %357, %v220_v2  }
   0xe   : > { %s451_s12 = smov (!%p191_p4, %s372_s12), 1 }
   0xf   : > { %s330_s20 = sshll.u32 %s451_s12, 4 }
  0x10   : > { %s198_s23 = scalar_lea.vmem %s442_s0, %s330_s20  ;;  %s208_s26 = scalar_lea.vmem %s445_s3, %s330_s20 }
  0x11   : > { %v210_v4 = vld [vmem:[%s198_s23] sm:$0xff]  ;;  %v211_v5 = vld [vmem:[%s198_s23 + $0x8] sm:$0xff] }
  0x87   : > { %v216_v3 = vpop.permute.xlu0 %215 }
  0x88   : > { %v218_v6 = vmul.f32 %v216_v3, %v210_v4  ;;  %v219_v7 = vmul.f32 %v216_v3, %v211_v5 }
  0x8b   : > { %v224_v8 = vpop.permute.xlu0 %223 }
  0x8c   : > { %v226_v9 = vadd.f32 %v224_v8, %v218_v6  ;;  %v227_v10 = vadd.f32 %v224_v8, %v219_v7 }
  0x8e   : > { %v228_v11 = vmax.f32 %v226_v9, 0.0  ;;  %v229_v12 = vmax.f32 %v227_v10, 0.0 }
  0x90   : > { %230 = vst [vmem:[%s208_s26] sm:$0xff] %v228_v11  ;;  %231 = vst [vmem:[%s208_s26 + $0x8] sm:$0xff] %v229_v12 }
  0x91 PF: > { %s13_s14 = sadd.s32 1, %s380_s14   ;;  %s446_s12 = smov %s376_s13 }
  0x92   : > { %p10_p5 = scmp.ge.s32.totalorder %s13_s14, 4   ;;  %s447_s13 = smov %s449_s15 }
  0x94   :  { %12 = sbr.rel (!%p10_p5) target bundleno = 2 (0x2), region = 62 }

// kernel: double_conv.3
= control target key start
LH: loop header
LB: loop body
LE: loop exit
PB: predicated region body
PF: predicated region fallthrough
CT: control target
= control target key end

     0   :  { %s1660_s18 = smov 0   ;;  %s1662_s19 = smov 0   ;;  %s1853_s0 = inlined_call_operand.vmem [shape: f32[2,8,256], index: 0, kind: input, shape index: {}]   ;;  %s1854_s1 = inlined_call_operand.vmem [shape: f32[2,1,2,8,16], index: 1, kind: input, shape index: {}]   ;;  %s1855_s2 = inlined_call_operand.vmem [shape: f32[9,8,8], index: 2, kind: input, shape index: {}]   ;;  %s1856_s3 = inlined_call_operand.vmem [shape: f32[9,256], index: 3, kind: input, shape index: {}]   ;;  %s1857_s4 = inlined_call_operand.vmem [shape: f32[2,8,256], index: 4, kind: output, shape index: {0}]   ;;  %s1858_s5 = inlined_call_operand.vmem [shape: f32[2,1,8,2], index: 5, kind: output, shape index: {1}]  }
   0x1   :  { %s1664_s20 = smov 0  }
   0x2 LB: > { %s28_s21 = sadd.s32 1, %s1611_s19  ;;  %p1507_p0 = scmp.ge.s32.totalorder %s1615_s20, 1  ;;  %s1615_s20 = sphi %s1664_s20, %s16_s20   ;;  %s1611_s19 = sphi %s1662_s19, %s1860_s19   ;;  %s1607_s18 = sphi %s1660_s18, %s1859_s18  }
   0x3   : > { %p30_p1 = scmp.ge.s32.totalorder %s28_s21, 2  ;;  %p240_p2 = scmp.lt.s32.totalorder %s1615_s20, 3 }
   0x5   : > { %s1862_s21 = smov (%p30_p1, %s28_s21), 0  ;;  %p241_p3 = pnand %p1507_p0, %p240_p2 }
   0x6   : > { %p298_p4 = scmp.lt.s32.totalorder (!%p241_p3), %s1607_s18, 1  ;;  %v377_v0 = vlaneseq (!%p241_p3)  ;;  %vm344_vm0 = vcmask (!%p241_p3), 130048   ;;  %v1689_v2 = vld [vmem:[%s1856_s3] sm:$0xff] (!%p241_p3)  ;;  %s1617_s6 = smov (!%p241_p3), 16   ;;  %v1706_v10 = vld [vmem:[%s1856_s3 + $0x8] sm:$0xff] (!%p241_p3)  ;;  %vm356_vm1 = vcmask (!%p241_p3), 1047680  }
   0x7   : > { %244 = sbr.rel (%p241_p3) target bundleno = 895 (0x37f), region = 36  ;;  %s1618_s9 = smov (!%p241_p3), 17   ;;  %vm364_vm2 = vcmask (!%p241_p3), 261248   ;;  %v1625_v34 = vmov (!%p241_p3), 0.0   ;;  %v1516_v35 = vld [vmem:[%s1855_s2 + $0x8] sm:$0xff] (!%p241_p3)  ;;  %vm405_vm3 = vcmask (!%p241_p3), 64512  }
   0x8   : > { %v1681_v1 = vshrl.u32 (!%p241_p3), %v377_v0, 7  ;;  %s1619_s10 = smov (!%p241_p3), 31   ;;  %s1620_s11 = smov (!%p241_p3), 1   ;;  %473 = vmatprep.mubr.f32.mxu1 (!%p241_p3), %v1625_v34  ;;  %865 = vmatprep.mubr.f32.mxu0 (!%p241_p3), %v1625_v34  ;;  %vm888_vm4 = vcmask (!%p241_p3), 138240   ;;  %vm1002_vm5 = vcmask (!%p241_p3), 252928   ;;  %vm568_vm6 = vcmask (!%p241_p3), 7168  }
   0x9   : > { %s1621_s12 = smov (!%p241_p3), 32   ;;  %s1622_s13 = smov (!%p241_p3), 15   ;;  %vm1116_vm7 = vcmask (!%p241_p3), 261120   ;;  %vm682_vm8 = vcmask (!%p241_p3), 121856   ;;  %vm1135_vm9 = vcmask (!%p241_p3), 785408   ;;  %vm793_vm10 = vcmask (!%p241_p3), 916480  }
   0xa   : > { %v876_v3 = vsub.s32 (!%p241_p3), 5, %v1681_v1  ;;  %v990_v8 = vsub.s32 (!%p241_p3), 6, %v1681_v1  ;;  %v556_v13 = vsub.s32 (!%p241_p3), 2, %v1681_v1  ;;  %v1104_v16 = vsub.s32 (!%p241_p3), 7, %v1681_v1  ;;  %s1623_s14 = smov (!%p241_p3), 96   ;;  %s1624_s15 = smov (!%p241_p3), 112  }
   0xb   : > { %v670_v19 = vsub.s32 (!%p241_p3), 3, %v1681_v1  ;;  %v395_v23 = vsub.s32 (!%p241_p3), 1, %v1681_v1  ;;  %s1626_s23 = smov (!%p241_p3), 97   ;;  %s1627_s24 = smov (!%p241_p3), 111   ;;  %vm907_vm12 = vcmask (!%p241_p3), 908288   ;;  %vm1021_vm13 = vcmask (!%p241_p3), 793600  }
   0xc   : > { %v877_v7 = vrot.slane (!%p241_p3), %v1689_v2, %v876_v3  ;;  %v991_v11 = vrot.slane (!%p241_p3), %v1689_v2, %v990_v8  ;;  %v881_v12 = vrot.slane (!%p241_p3), %v1706_v10, %v876_v3  ;;  %v557_v14 = vrot.slane (!%p241_p3), %v1689_v2, %v556_v13  ;;  %s1628_s25 = smov (!%p241_p3), 127   ;;  %s1629_s26 = smov (!%p241_p3), 113  }
   0xd   : > { %v995_v15 = vrot.slane (!%p241_p3), %v1706_v10, %v990_v8  ;;  %v1105_v17 = vrot.slane (!%p241_p3), %v1689_v2, %v1104_v16  ;;  %v561_v18 = vrot.slane (!%p241_p3), %v1706_v10, %v556_v13  ;;  %v671_v20 = vrot.slane (!%p241_p3), %v1689_v2, %v670_v19 }
   0xe   : > { %s1864_s18 = smov (!%p298_p4, %s1607_s18), 1  ;;  %v1109_v21 = vrot.slane %v1706_v10, %v1104_v16  ;;  %v675_v22 = vrot.slane %v1706_v10, %v670_v19  ;;  %v400_v26 = vrot.slane %v1706_v10, %v395_v23  ;;  %v396_v29 = vrot.slane %v1689_v2, %v395_v23  ;;  %v1523_v19 = vld [vmem:[%s1855_s2 + $0x20] sm:$0xff] }
   0xf   : > { %s1684_s22 = sshll.u32 %s1864_s18, 4  ;;  %v384_v13 = vsub.s32 0, %v1681_v1  ;;  %vm587_vm14 = vcmask 1039360  }
  0x10   : > { %s315_s27 = scalar_lea.vmem %s1854_s1, %s1684_s22  ;;  %s305_s30 = scalar_lea.vmem %s1853_s0, %s1684_s22 }
  0x11   : > { %v1515_v4 = vld [vmem:[%s315_s27 + $0x8] sm:$0xff]  ;;  %v341_v5 = vld [vmem:[%s315_s27] sm:$0xff]  ;;  %s330_s29 = scalar_lea.vmem %s1857_s4, %s1684_s22 }
  0x12   : > { %v339_v6 = vld [vmem:[%s305_s30] sm:$0xff]  ;;  %361 = vrot.lane.b32.xlu1 %v1515_v4, %s1617_s6  ;;  %345 = vst.msk [vmem:[#allocation2] sm:$0xff] %vm344_vm0, %v341_v5  ;;  %v340_v9 = vld [vmem:[%s305_s30 + $0x8] sm:$0xff]  ;;  %s1514_s30 = sshll.u32 %s1864_s18, 3 }
  0x13   : > { %348 = vrot.lane.b32.xlu0 %v339_v6, %s1617_s6  ;;  %s338_s8 = scalar_lea.vmem %s1858_s5, %s1514_s30 }
  0x16   : > { %884 = vrot.lane.b32.xlu1 %v877_v7, %s1618_s9 }
  0x17   : > { %350 = vrot.lane.b32.xlu0 %v340_v9, %s1617_s6 }
  0x1a   : > { %998 = vrot.lane.b32.xlu1 %v991_v11, %s1619_s10 }
  0x1b   : > { %886 = vrot.lane.b32.xlu0 %v881_v12, %s1618_s9  ;;  %v1781_v12 = vand.u32 127, %v377_v0  ;;  %v389_v0 = vrot.slane %v1706_v10, %v384_v13 }
  0x1d   : > { %vm379_vm11 = vcmp.lt.s32.totalorder %v1781_v12, 1  ;;  %vm1230_vm15 = vcmp.lt.s32.totalorder %v1781_v12, 127 }
  0x1e   : > { %564 = vrot.lane.b32.xlu1 %v557_v14, %s1620_s11 }
  0x1f   : > { %1000 = vrot.lane.b32.xlu0 %v995_v15, %s1619_s10 }
  0x22   : > { %1112 = vrot.lane.b32.xlu1 %v1105_v17, %s1621_s12 }
  0x23   : > { %566 = vrot.lane.b32.xlu0 %v561_v18, %s1620_s11 }
  0x26   : > { %678 = vrot.lane.b32.xlu1 %v671_v20, %s1622_s13  ;;  %v385_v20 = vrot.slane %v1689_v2, %v384_v13 }
  0x27   : > { %1114 = vrot.lane.b32.xlu0 %v1109_v21, %s1621_s12 }
  0x2b   : > { %680 = vrot.lane.b32.xlu0 %v675_v22, %s1622_s13 }
  0x84   : > { %v362_v25 = vpop.permute.xlu1 %361 }
  0x85   : > { %v349_v24 = vpop.permute.xlu0 %348 }
  0x86   : > { %357 = vst.msk [vmem:[#allocation2] sm:$0xff] %vm356_vm1, %v349_v24  ;;  %vm1334_vm1 = vcmask 15368  }
  0x88   : > { %v885_v31 = vpop.permute.xlu1 %884 }
  0x89   : > { %v351_v27 = vpop.permute.xlu0 %350 }
  0x8a   : > { %v1725_v28 = vsel %vm344_vm0, %v349_v24, %v351_v27  ;;  %359 = vst.msk [vmem:[#allocation2 + $0x10] sm:$0xff] %vm344_vm0, %v351_v27  ;;  %vm701_vm0 = vcmask 924672  }
  0x8b   : > { %365 = vst.msk [vmem:[#allocation2 + $0x10] sm:$0xff] %vm364_vm2, %v362_v25  ;;  %1218 = vrot.lane.b32.xlu0 %v1725_v28, %s1623_s14  ;;  %v402_v30 = vmul.f32 %v400_v26, %v1725_v28  ;;  %v392_v26 = vld [vmem:[%s1855_s2] sm:$0xff] }
  0x8c   : > { %v999_v36 = vpop.permute.xlu1 %998 }
  0x8d   : > { %v1732_v32 = vld [vmem:[#allocation2] sm:$0xff]  ;;  %409 = vmatprep.subr.mxu1 %v402_v30  ;;  %v887_v38 = vpop.permute.xlu0 %886 }
  0x8e   : > { %1216 = vrot.lane.b32.xlu1 %v1732_v32, %s1623_s14  ;;  %v401_v33 = vmul.f32 %v396_v29, %v1732_v32  ;;  %v1007_v40 = vmul.f32 %v999_v36, %v1732_v32  ;;  %v893_v41 = vmul.f32 %v885_v31, %v1732_v32  ;;  %v889_v44 = vsel %vm888_vm4, %v885_v31, %v887_v38  ;;  %v1525_v31 = vld [vmem:[%s1855_s2 + $0x28] sm:$0xff] }
  0x8f   : > { %787 = vrot.lane.b32.xlu0 %v1732_v32, %s1624_s15  ;;  %v894_v46 = vmul.f32 %v889_v44, %v1725_v28 }
  0x90   : > { %410 = vmatpush1.msra.mxu1 %v401_v33  ;;  %v565_v39 = vpop.permute.xlu1 %564 }
  0x91   : > { %1517 = vmatmul.mubr.msk.f32.vlgmr.msra.gmra.mrb[0].mxu1 %vm405_vm3, %v1516_v35  ;;  %v1001_v43 = vpop.permute.xlu0 %1000  ;;  %v573_v50 = vmul.f32 %v565_v39, %v1732_v32 }
  0x92   : > { %v1743_v37 = vld [vmem:[#allocation2 + $0x10] sm:$0xff]  ;;  %547 = vmatprep.mubr.f32.mxu1 %v1625_v34  ;;  %v1003_v48 = vsel %vm1002_vm5, %v999_v36, %v1001_v43 }
  0x93   : > { %1220 = vrot.lane.b32.xlu1 %v1743_v37, %s1623_s14  ;;  %373 = vrot.lane.b32.xlu0 %v1732_v32, %s1620_s11  ;;  %v895_v42 = vmul.f32 %v887_v38, %v1743_v37  ;;  %v1008_v51 = vmul.f32 %v1003_v48, %v1725_v28  ;;  %v1009_v52 = vmul.f32 %v1001_v43, %v1743_v37  ;;  %v1519_v43 = vld [vmem:[%s1855_s2 + $0x10] sm:$0xff]  ;;  %v1529_v48 = vld [vmem:[%s1855_s2 + $0x38] sm:$0xff] }
  0x94   : > { %v1113_v45 = vpop.permute.xlu1 %1112 }
  0x95   : > { %v1121_v47 = vmul.f32 %v1113_v45, %v1732_v32  ;;  %v567_v49 = vpop.permute.xlu0 %566 }
  0x96   : > { %v575_v53 = vmul.f32 %v567_v49, %v1743_v37  ;;  %v569_v55 = vsel %vm568_vm6, %v565_v39, %v567_v49 }
  0x97   : > { %791 = vrot.lane.b32.xlu1 %v1743_v37, %s1624_s15  ;;  %789 = vrot.lane.b32.xlu0 %v1725_v28, %s1624_s15  ;;  %v574_v56 = vmul.f32 %v569_v55, %v1725_v28 }
  0x98   : > { %v679_v60 = vpop.permute.xlu1 %678 }
  0x99   : > { %v1115_v54 = vpop.permute.xlu0 %1114  ;;  %v687_v7 = vmul.f32 %v679_v60, %v1732_v32 }
  0x9a   : > { %v1123_v57 = vmul.f32 %v1115_v54, %v1743_v37  ;;  %v1117_v58 = vsel %vm1116_vm7, %v1113_v45, %v1115_v54 }
  0x9b   : > { %375 = vrot.lane.b32.xlu1 %v1725_v28, %s1620_s11  ;;  %1015 = vrot.lane.b32.xlu0 %v1007_v40, %s1626_s23  ;;  %v1122_v61 = vmul.f32 %v1117_v58, %v1725_v28  ;;  %v1533_v58 = vld [vmem:[%s1855_s2 + $0x40] sm:$0xff] }
  0x9d   : > { %v681_v59 = vpop.permute.xlu0 %680 }
  0x9e   : > { %v683_v62 = vsel %vm682_vm8, %v679_v60, %v681_v59  ;;  %v689_v14 = vmul.f32 %v681_v59, %v1743_v37  ;;  %v1527_v37 = vld [vmem:[%s1855_s2 + $0x30] sm:$0xff] }
  0x9f   : > { %901 = vrot.lane.b32.xlu1 %v893_v41, %s1627_s24  ;;  %905 = vrot.lane.b32.xlu0 %v895_v42, %s1627_s24  ;;  %v688_v63 = vmul.f32 %v683_v62, %v1725_v28 }
  0xa3   : > { %903 = vrot.lane.b32.xlu1 %v894_v46, %s1627_s24  ;;  %1129 = vrot.lane.b32.xlu0 %v1121_v47, %s1623_s14 }
  0xa7   : > { %581 = vrot.lane.b32.xlu1 %v573_v50, %s1628_s25  ;;  %1017 = vrot.lane.b32.xlu0 %v1008_v51, %s1626_s23  ;;  %v1531_v51 = vld [vmem:[%s1856_s3 + $0x10] ss:$0 sm:$0xff] }
  0xab   : > { %1019 = vrot.lane.b32.xlu1 %v1009_v52, %s1626_s23  ;;  %585 = vrot.lane.b32.xlu0 %v575_v53, %s1628_s25  ;;  %v1532_v52 = vld [vmem:[%s1856_s3 + $0x18] ss:$0 sm:$0xff] }
  0xaf   : > { %583 = vrot.lane.b32.xlu1 %v574_v56, %s1628_s25  ;;  %1133 = vrot.lane.b32.xlu0 %v1123_v57, %s1623_s14 }
  0xb3   : > { %1131 = vrot.lane.b32.xlu1 %v1122_v61, %s1623_s14  ;;  %v1521_v61 = vld [vmem:[%s1855_s2 + $0x18] sm:$0xff] }
  0xb7   : > { %697 = vrot.lane.b32.xlu1 %v688_v63, %s1629_s26 }
  0xfd   : > { %v1219_v3 = vpop.permute.xlu0 %1218 }
 0x100   : > { %v1217_v4 = vpop.permute.xlu1 %1216 }
 0x101   : > { %v1222_v5 = vsel %vm1135_vm9, %v1217_v4, %v1219_v3  ;;  %v788_v6 = vpop.permute.xlu0 %787 }
 0x102   : > { %1226 = vrot.lane.b32.xlu1 %v1222_v5, %s1628_s25 }
 0x105   : > { %v1221_v8 = vpop.permute.xlu1 %1220  ;;  %v374_v9 = vpop.permute.xlu0 %373 }
 0x106   : > { %v1223_v11 = vsel %vm1135_vm9, %v1219_v3, %v1221_v8  ;;  %695 = vrot.lane.b32.xlu1 %v687_v7, %s1629_s26 }
 0x107   : > { %1228 = vrot.lane.b32.xlu0 %v1223_v11, %s1628_s25 }
 0x109   : > { %v792_v15 = vpop.permute.xlu1 %791  ;;  %v790_v16 = vpop.permute.xlu0 %789 }
 0x10a   : > { %v795_v17 = vsel %vm793_vm10, %v790_v16, %v792_v15  ;;  %v794_v18 = vsel %vm793_vm10, %v788_v6, %v790_v16 }
 0x10b   : > { %699 = vrot.lane.b32.xlu0 %v689_v14, %s1629_s26  ;;  %801 = vmatprep.subr.mxu0 %v795_v17 }
 0x10c   : > { %802 = vmatpush1.msra.mxu0 %v794_v18 }
 0x10d   : > { %v376_v1 = vpop.permute.xlu1 %375  ;;  %v1016_v21 = vpop.permute.xlu0 %1015  ;;  %1524 = vmatmul.mubr.msk.f32.vlgmr.msra.gmra.mrb[0].mxu0 %vm405_vm3, %v1523_v19 }
 0x10e   : > { %v380_v22 = vsel %vm379_vm11, %v374_v9, %v376_v1  ;;  %v381_v23 = vsel %vm379_vm11, %v376_v1, %v374_v9  ;;  %979 = vmatprep.mubr.f32.mxu0 %v1625_v34 }
 0x10f   : > { %v390_v24 = vmul.f32 %v385_v20, %v381_v23  ;;  %v391_v25 = vmul.f32 %v389_v0, %v380_v22 }
 0x111   : > { %v902_v27 = vpop.permute.xlu1 %901  ;;  %483 = vmatprep.subr.mxu1 %v391_v25  ;;  %v906_v2 = vpop.permute.xlu0 %905 }
 0x112   : > { %484 = vmatpush1.msra.mxu1 %v390_v24 }
 0x113   : > { %1518 = vmatmul.mubr.msk.f32.vlgmr.msra.gmra.mrb[0].mxu1 %vm405_vm3, %v392_v26 }
 0x114   : > { %659 = vmatprep.mubr.f32.mxu1 %v1625_v34 }
 0x115   : > { %v904_v10 = vpop.permute.xlu1 %903  ;;  %v1130_v28 = vpop.permute.xlu0 %1129 }
 0x116   : > { %v908_v29 = vsel %vm907_vm12, %v902_v27, %v904_v10  ;;  %v909_v30 = vsel %vm907_vm12, %v904_v10, %v906_v2 }
 0x117   : > { %915 = vmatprep.subr.mxu0 %v909_v30 }
 0x118   : > { %916 = vmatpush1.msra.mxu0 %v908_v29 }
 0x119   : > { %v582_v32 = vpop.permute.xlu1 %581  ;;  %v1018_v33 = vpop.permute.xlu0 %1017  ;;  %1526 = vmatmul.mubr.msk.f32.vlgmr.msra.gmra.mrb[0].mxu0 %vm405_vm3, %v1525_v31 }
 0x11a   : > { %1093 = vmatprep.mubr.f32.mxu0 %v1625_v34  ;;  %v1022_v38 = vsel %vm1021_vm13, %v1016_v21, %v1018_v33 }
 0x11d   : > { %v1020_v35 = vpop.permute.xlu1 %1019  ;;  %v586_v39 = vpop.permute.xlu0 %585 }
 0x11e   : > { %v1023_v36 = vsel %vm1021_vm13, %v1018_v33, %v1020_v35 }
 0x11f   : > { %1029 = vmatprep.subr.mxu0 %v1023_v36 }
 0x120   : > { %1030 = vmatpush1.msra.mxu0 %v1022_v38 }
 0x121   : > { %v584_v40 = vpop.permute.xlu1 %583  ;;  %1528 = vmatmul.mubr.msk.f32.vlgmr.msra.gmra.mrb[0].mxu0 %vm405_vm3, %v1527_v37  ;;  %v1134_v45 = vpop.permute.xlu0 %1133 }
 0x122   : > { %v588_v41 = vsel %vm587_vm14, %v582_v32, %v584_v40  ;;  %v589_v42 = vsel %vm587_vm14, %v584_v40, %v586_v39  ;;  %1207 = vmatprep.mubr.f32.mxu0 %v1625_v34 }
 0x123   : > { %595 = vmatprep.subr.mxu1 %v589_v42 }
 0x124   : > { %596 = vmatpush1.msra.mxu1 %v588_v41 }
 0x125   : > { %v1132_v44 = vpop.permute.xlu1 %1131  ;;  %1520 = vmatmul.mubr.msk.f32.vlgmr.msra.gmra.mrb[0].mxu1 %vm405_vm3, %v1519_v43 }
 0x126   : > { %v1136_v46 = vsel %vm1135_vm9, %v1130_v28, %v1132_v44  ;;  %v1137_v47 = vsel %vm1135_vm9, %v1132_v44, %v1134_v45  ;;  %773 = vmatprep.mubr.f32.mxu1 %v1625_v34 }
 0x127   : > { %1143 = vmatprep.subr.mxu0 %v1137_v47 }
 0x128   : > { %1144 = vmatpush1.msra.mxu0 %v1136_v46 }
 0x129   : > { %1530 = vmatmul.mubr.msk.f32.vlgmr.msra.gmra.mrb[0].mxu0 %vm405_vm3, %v1529_v48  ;;  %v698_v49 = vpop.permute.xlu1 %697 }
 0x12a   : > { %1312 = vmatprep.mubr.f32.mxu0 %v1625_v34 }
 0x174   : > { %v1227_v50 = vpop.permute.xlu1 %1226 }
 0x178   : > { %v696_v34 = vpop.permute.xlu1 %695 }
 0x179   : > { %v1229_v53 = vpop.permute.xlu0 %1228  ;;  %v702_v62 = vsel %vm701_vm0, %v696_v34, %v698_v49 }
 0x17a   : > { %v1231_v54 = vsel %vm1230_vm15, %v1227_v50, %v1229_v53  ;;  %v1232_v55 = vsel %vm1230_vm15, %v1229_v53, %v1227_v50 }
 0x17b   : > { %v1241_v56 = vmul.f32 %v1531_v51, %v1231_v54  ;;  %v1242_v57 = vmul.f32 %v1532_v52, %v1232_v55 }
 0x17d   : > { %1248 = vmatprep.subr.mxu0 %v1242_v57  ;;  %v700_v59 = vpop.permute.xlu0 %699 }
 0x17e   : > { %1249 = vmatpush1.msra.mxu0 %v1241_v56  ;;  %v703_v60 = vsel %vm701_vm0, %v698_v49, %v700_v59 }
 0x17f   : > { %709 = vmatprep.subr.mxu1 %v703_v60  ;;  %1534 = vmatmul.mubr.msk.f32.vlgmr.msra.gmra.mrb[0].mxu0 %vm405_vm3, %v1533_v58 }
 0x180   : > { %710 = vmatpush1.msra.mxu1 %v702_v62 }
 0x181   : > { %1522 = vmatmul.mubr.msk.f32.vlgmr.msra.gmra.mrb[0].mxu1 %vm405_vm3, %v1521_v61 }
 0x252   : > { %v1314_v63 = vpop.f32.mrb[0].mxu0 }
 0x253   : > { %v1316_v3 = vpop.f32.mrb[1].mxu0 }
 0x254   : > { %v775_v4 = vpop.f32.mrb[0].mxu1 }
 0x255   : > { %v1540_v5 = vadd.f32 %v1314_v63, %v775_v4  ;;  %v777_v6 = vpop.f32.mrb[1].mxu1 }
 0x256   : > { %v1541_v7 = vadd.f32 %v1316_v3, %v777_v6 }
 0x257   : > { %1336 = vst [vmem:[%s330_s29] sm:$0xff] %v1540_v5 }
 0x258   : > { %1337 = vst [vmem:[%s330_s29 + $0x8] sm:$0xff] %v1541_v7  ;;  %v1321_v8 = vadd.f32 %v1541_v7, %v1540_v5 }
 0x25a   : > { %1322 = vadd.xlane.f32.xlu0 %v1321_v8 }
 0x2e7   : > { %v1323_v9 = vpop.xlane.xlu0 %1322 }
 0x2e8   : > { %v1325_v11 = vmul.f32 0.00390625, %v1323_v9 }
 0x2ea   : > { %1328 = vst.msk [vmem:[%s338_s8] sm:$0xff] %vm568_vm6, %v1325_v11  ;;  %v1326_v12 = vsub.f32 %v1540_v5, %v1325_v11  ;;  %v1327_v13 = vsub.f32 %v1541_v7, %v1325_v11 }
 0x2ec   : > { %v1329_v14 = vmul.f32 %v1326_v12, %v1326_v12  ;;  %v1330_v15 = vmul.f32 %v1327_v13, %v1327_v13 }
 0x2ee   : > { %v1331_v16 = vadd.f32 %v1330_v15, %v1329_v14 }
 0x2f0   : > { %1332 = vadd.xlane.f32.xlu1 %v1331_v16 }
 0x37d   : > { %v1333_v17 = vpop.xlane.xlu1 %1332 }
 0x37e   : > { %1335 = vst.msk [vmem:[%s338_s8] sm:$0xff] %vm1334_vm1, %v1333_v17 }
 0x37f PF: > { %s16_s20 = sadd.s32 1, %s1615_s20   ;;  %s1859_s18 = smov %s1611_s19 }
 0x380   : > { %p13_p5 = scmp.ge.s32.totalorder %s16_s20, 4   ;;  %s1860_s19 = smov %s1862_s21 }
 0x382   :  { %15 = sbr.rel (!%p13_p5) target bundleno = 2 (0x2), region = 93 }

// kernel: double_conv.4
= control target key start
LH: loop header
LB: loop body
LE: loop exit
PB: predicated region body
PF: predicated region fallthrough
CT: control target
= control target key end

     0   :  { %s1751_s24 = smov 0   ;;  %s1753_s25 = smov 0   ;;  %s1950_s0 = inlined_call_operand.vmem [shape: f32[2,8,256], index: 0, kind: input, shape index: {}]   ;;  %s1951_s1 = inlined_call_operand.vmem [shape: f32[2,1,2,8,16], index: 1, kind: input, shape index: {}]   ;;  %s1952_s2 = inlined_call_operand.vmem [shape: f32[9,8,8], index: 2, kind: input, shape index: {}]   ;;  %s1953_s3 = inlined_call_operand.vmem [shape: f32[9,256], index: 3, kind: input, shape index: {}]   ;;  %s1954_s4 = inlined_call_operand.vmem [shape: f32[8,1], index: 4, kind: input, shape index: {}]   ;;  %s1955_s5 = inlined_call_operand.vmem [shape: f32[8,1], index: 5, kind: input, shape index: {}]   ;;  %s1956_s6 = inlined_call_operand.vmem [shape: f32[2,8,256], index: 6, kind: output, shape index: {0}]   ;;  %s1957_s7 = inlined_call_operand.vmem [shape: f32[2,1,8,2], index: 7, kind: output, shape index: {1}]  }
   0x1   :  { %s1755_s26 = smov 0  }
   0x2 LB: > { %s30_s27 = sadd.s32 1, %s1691_s25  ;;  %p1585_p0 = scmp.ge.s32.totalorder %s1695_s26, 1  ;;  %s1695_s26 = sphi %s1755_s26, %s18_s26   ;;  %s1691_s25 = sphi %s1753_s25, %s1959_s25   ;;  %s1687_s24 = sphi %s1751_s24, %s1958_s24  }
   0x3   : > { %p32_p1 = scmp.ge.s32.totalorder %s30_s27, 2  ;;  %p290_p2 = scmp.lt.s32.totalorder %s1695_s26, 3 }
   0x5   : > { %s1961_s27 = smov (%p32_p1, %s30_s27), 0  ;;  %p291_p3 = pnand %p1585_p0, %p290_p2 }
   0x6   : > { %v393_v0 = vld [vmem:[%s1954_s4] sm:$0xff] (!%p291_p3)  ;;  %v1697_v1 = vmov (!%p291_p3), 0   ;;  %p352_p4 = scmp.lt.s32.totalorder (!%p291_p3), %s1687_s24, 1  ;;  %v455_v3 = vlaneseq (!%p291_p3)  ;;  %v1795_v19 = vld [vmem:[%s1953_s3 + $0x8] sm:$0xff] (!%p291_p3)  ;;  %vm422_vm0 = vcmask (!%p291_p3), 130048   ;;  %s1698_s18 = smov (!%p291_p3), 16  }
   0x7   : > { %294 = sbr.rel (%p291_p3) target bundleno = 1020 (0x3fc), region = 44  ;;  %1672 = vset.pattern.permute.xlu0 (!%p291_p3), %v1697_v1  ;;  %v394_v2 = vld [vmem:[%s1955_s5] sm:$0xff] (!%p291_p3)  ;;  %s1699_s21 = smov (!%p291_p3), 17   ;;  %vm434_vm1 = vcmask (!%p291_p3), 1047680   ;;  %vm442_vm2 = vcmask (!%p291_p3), 261248   ;;  %v1706_v51 = vmov (!%p291_p3), 0.0  }
   0x8   : > { %399 = vperm.xlu0 (!%p291_p3), %1672, %v393_v0   ;;  %v1789_v8 = vshrl.u32 (!%p291_p3), %v455_v3, 7  ;;  %v1803_v26 = vld [vmem:[%s1953_s3] sm:$0xff] (!%p291_p3)  ;;  %s1700_s22 = smov (!%p291_p3), 31   ;;  %s1701_s23 = smov (!%p291_p3), 1   ;;  %551 = vmatprep.mubr.f32.mxu1 (!%p291_p3), %v1706_v51  ;;  %v1594_v52 = vld [vmem:[%s1952_s2 + $0x8] sm:$0xff] (!%p291_p3)  ;;  %vm483_vm3 = vcmask (!%p291_p3), 64512  }
   0x9   : > { %s1702_s28 = smov (!%p291_p3), 32   ;;  %s1703_s29 = smov (!%p291_p3), 15   ;;  %943 = vmatprep.mubr.f32.mxu0 (!%p291_p3), %v1706_v51  ;;  %vm966_vm4 = vcmask (!%p291_p3), 138240   ;;  %vm1080_vm5 = vcmask (!%p291_p3), 252928   ;;  %vm646_vm6 = vcmask (!%p291_p3), 7168   ;;  %vm1194_vm7 = vcmask (!%p291_p3), 261120  }
   0xa   : > { %v954_v14 = vsub.s32 (!%p291_p3), 5, %v1789_v8  ;;  %v1068_v25 = vsub.s32 (!%p291_p3), 6, %v1789_v8  ;;  %v634_v30 = vsub.s32 (!%p291_p3), 2, %v1789_v8  ;;  %v1182_v33 = vsub.s32 (!%p291_p3), 7, %v1789_v8  ;;  %s1704_s30 = smov (!%p291_p3), 96   ;;  %s1705_s8 = smov (!%p291_p3), 112  }
   0xb   : > { %v748_v36 = vsub.s32 (!%p291_p3), 3, %v1789_v8  ;;  %v473_v40 = vsub.s32 (!%p291_p3), 1, %v1789_v8  ;;  %s1708_s13 = smov (!%p291_p3), 111   ;;  %s1709_s14 = smov (!%p291_p3), 127   ;;  %vm760_vm8 = vcmask (!%p291_p3), 121856   ;;  %vm1213_vm9 = vcmask (!%p291_p3), 785408  }
   0xc   : > { %406 = vperm.xlu0 (!%p291_p3), %1672, %v394_v2   ;;  %v959_v24 = vrot.slane (!%p291_p3), %v1795_v19, %v954_v14  ;;  %v1073_v28 = vrot.slane (!%p291_p3), %v1795_v19, %v1068_v25  ;;  %v955_v29 = vrot.slane (!%p291_p3), %v1803_v26, %v954_v14  ;;  %v639_v31 = vrot.slane (!%p291_p3), %v1795_v19, %v634_v30 }
   0xd   : > { %v1069_v32 = vrot.slane (!%p291_p3), %v1803_v26, %v1068_v25  ;;  %v1187_v34 = vrot.slane (!%p291_p3), %v1795_v19, %v1182_v33  ;;  %v635_v35 = vrot.slane (!%p291_p3), %v1803_v26, %v634_v30  ;;  %v753_v37 = vrot.slane (!%p291_p3), %v1795_v19, %v748_v36 }
   0xe   : > { %s1963_s24 = smov (!%p352_p4, %s1687_s24), 1  ;;  %v1183_v38 = vrot.slane %v1803_v26, %v1182_v33  ;;  %v749_v39 = vrot.slane %v1803_v26, %v748_v36  ;;  %v478_v42 = vrot.slane %v1795_v19, %v473_v40  ;;  %v474_v46 = vrot.slane %v1803_v26, %v473_v40  ;;  %v1601_v36 = vld [vmem:[%s1952_s2 + $0x20] sm:$0xff] }
   0xf   : > { %s1778_s9 = sshll.u32 %s1963_s24, 4  ;;  %v462_v30 = vsub.s32 0, %v1789_v8  ;;  %vm871_vm10 = vcmask 916480   ;;  %vm985_vm12 = vcmask 908288   ;;  %vm1099_vm13 = vcmask 793600  }
  0x10   : > { %s359_s12 = scalar_lea.vmem %s1950_s0, %s1778_s9  ;;  %s369_s15 = scalar_lea.vmem %s1951_s1, %s1778_s9  ;;  %vm665_vm14 = vcmask 1039360  }
  0x11   : > { %v413_v5 = vld [vmem:[%s369_s15] sm:$0xff]  ;;  %v1593_v6 = vld [vmem:[%s369_s15 + $0x8] sm:$0xff]  ;;  %s1710_s15 = smov 113   ;;  %s384_s20 = scalar_lea.vmem %s1956_s6, %s1778_s9 }
  0x12   : > { %v395_v7 = vld [vmem:[%s359_s12] sm:$0xff]  ;;  %v396_v9 = vld [vmem:[%s359_s12 + $0x8] sm:$0xff]  ;;  %s1707_s12 = smov 97  }
  0x87   : > { %v400_v4 = vpop.permute.xlu0 %399 }
  0x88   : > { %v414_v10 = vmul.f32 %v413_v5, %v400_v4  ;;  %v419_v11 = vmul.f32 %v1593_v6, %v400_v4  ;;  %v402_v12 = vmul.f32 %v400_v4, %v395_v7  ;;  %v403_v15 = vmul.f32 %v400_v4, %v396_v9 }
  0x8b   : > { %v407_v13 = vpop.permute.xlu0 %406 }
  0x8c   : > { %v415_v16 = vadd.f32 %v414_v10, %v407_v13  ;;  %v420_v17 = vadd.f32 %v419_v11, %v407_v13  ;;  %v409_v18 = vadd.f32 %v407_v13, %v402_v12  ;;  %v410_v22 = vadd.f32 %v407_v13, %v403_v15 }
  0x8e   : > { %v421_v20 = vmax.f32 %v420_v17, 0.0  ;;  %v411_v21 = vmax.f32 %v409_v18, 0.0  ;;  %v416_v23 = vmax.f32 %v415_v16, 0.0  ;;  %v412_v27 = vmax.f32 %v410_v22, 0.0 }
  0x90   : > { %439 = vrot.lane.b32.xlu0 %v421_v20, %s1698_s18  ;;  %426 = vrot.lane.b32.xlu1 %v411_v21, %s1698_s18  ;;  %423 = vst.msk [vmem:[#allocation2] sm:$0xff] %vm422_vm0, %v416_v23 }
  0x94   : > { %964 = vrot.lane.b32.xlu0 %v959_v24, %s1699_s21  ;;  %428 = vrot.lane.b32.xlu1 %v412_v27, %s1698_s18 }
  0x98   : > { %1078 = vrot.lane.b32.xlu0 %v1073_v28, %s1700_s22  ;;  %962 = vrot.lane.b32.xlu1 %v955_v29, %s1699_s21  ;;  %v1878_v29 = vand.u32 127, %v455_v3  ;;  %v467_v3 = vrot.slane %v1795_v19, %v462_v30  ;;  %s1592_s21 = sshll.u32 %s1963_s24, 3 }
  0x9a   : > { %vm457_vm11 = vcmp.lt.s32.totalorder %v1878_v29, 1  ;;  %vm1308_vm15 = vcmp.lt.s32.totalorder %v1878_v29, 127 }
  0x9c   : > { %644 = vrot.lane.b32.xlu0 %v639_v31, %s1701_s23  ;;  %1076 = vrot.lane.b32.xlu1 %v1069_v32, %s1700_s22 }
  0xa0   : > { %1192 = vrot.lane.b32.xlu0 %v1187_v34, %s1702_s28  ;;  %642 = vrot.lane.b32.xlu1 %v635_v35, %s1701_s23 }
  0xa4   : > { %758 = vrot.lane.b32.xlu0 %v753_v37, %s1703_s29  ;;  %1190 = vrot.lane.b32.xlu1 %v1183_v38, %s1702_s28  ;;  %v463_v37 = vrot.slane %v1803_v26, %v462_v30  ;;  %s392_s28 = scalar_lea.vmem %s1957_s7, %s1592_s21 }
  0xa8   : > { %756 = vrot.lane.b32.xlu1 %v749_v39, %s1703_s29 }
 0x102   : > { %v427_v41 = vpop.permute.xlu1 %426  ;;  %v440_v44 = vpop.permute.xlu0 %439 }
 0x103   : > { %435 = vst.msk [vmem:[#allocation2] sm:$0xff] %vm434_vm1, %v427_v41  ;;  %vm1412_vm1 = vcmask 15368  }
 0x106   : > { %v429_v43 = vpop.permute.xlu1 %428  ;;  %v965_v55 = vpop.permute.xlu0 %964 }
 0x107   : > { %v1822_v45 = vsel %vm422_vm0, %v427_v41, %v429_v43  ;;  %437 = vst.msk [vmem:[#allocation2 + $0x10] sm:$0xff] %vm422_vm0, %v429_v43  ;;  %v470_v43 = vld [vmem:[%s1952_s2] sm:$0xff]  ;;  %vm779_vm0 = vcmask 924672  }
 0x108   : > { %443 = vst.msk [vmem:[#allocation2 + $0x10] sm:$0xff] %vm442_vm2, %v440_v44  ;;  %1296 = vrot.lane.b32.xlu0 %v1822_v45, %s1704_s30  ;;  %v480_v47 = vmul.f32 %v478_v42, %v1822_v45 }
 0x10a   : > { %v1829_v48 = vld [vmem:[#allocation2] sm:$0xff]  ;;  %v963_v49 = vpop.permute.xlu1 %962  ;;  %487 = vmatprep.subr.mxu1 %v480_v47  ;;  %v1079_v60 = vpop.permute.xlu0 %1078 }
 0x10b   : > { %1294 = vrot.lane.b32.xlu1 %v1829_v48, %s1704_s30  ;;  %v479_v50 = vmul.f32 %v474_v46, %v1829_v48  ;;  %v971_v58 = vmul.f32 %v963_v49, %v1829_v48  ;;  %v967_v61 = vsel %vm966_vm4, %v963_v49, %v965_v55 }
 0x10c   : > { %865 = vrot.lane.b32.xlu0 %v1829_v48, %s1705_s8  ;;  %v972_v63 = vmul.f32 %v967_v61, %v1822_v45 }
 0x10d   : > { %488 = vmatpush1.msra.mxu1 %v479_v50 }
 0x10e   : > { %v1077_v54 = vpop.permute.xlu1 %1076  ;;  %1595 = vmatmul.mubr.msk.f32.vlgmr.msra.gmra.mrb[0].mxu1 %vm483_vm3, %v1594_v52  ;;  %v645_v2 = vpop.permute.xlu0 %644 }
 0x10f   : > { %v1840_v53 = vld [vmem:[#allocation2 + $0x10] sm:$0xff]  ;;  %625 = vmatprep.mubr.f32.mxu1 %v1706_v51  ;;  %v1085_v57 = vmul.f32 %v1077_v54, %v1829_v48  ;;  %v1081_v1 = vsel %vm1080_vm5, %v1077_v54, %v1079_v60 }
 0x110   : > { %1298 = vrot.lane.b32.xlu1 %v1840_v53, %s1704_s30  ;;  %451 = vrot.lane.b32.xlu0 %v1829_v48, %s1701_s23  ;;  %v973_v59 = vmul.f32 %v965_v55, %v1840_v53  ;;  %v1086_v4 = vmul.f32 %v1081_v1, %v1822_v45  ;;  %v1087_v6 = vmul.f32 %v1079_v60, %v1840_v53  ;;  %v1605_v54 = vld [vmem:[%s1952_s2 + $0x30] sm:$0xff]  ;;  %v1607_v1 = vld [vmem:[%s1952_s2 + $0x38] sm:$0xff] }
 0x111   : > { %v653_v7 = vmul.f32 %v645_v2, %v1840_v53  ;;  %v1597_v60 = vld [vmem:[%s1952_s2 + $0x10] sm:$0xff] }
 0x112   : > { %v643_v56 = vpop.permute.xlu1 %642  ;;  %v1193_v9 = vpop.permute.xlu0 %1192 }
 0x113   : > { %v651_v5 = vmul.f32 %v643_v56, %v1829_v48  ;;  %v647_v10 = vsel %vm646_vm6, %v643_v56, %v645_v2  ;;  %v1201_v11 = vmul.f32 %v1193_v9, %v1840_v53 }
 0x114   : > { %869 = vrot.lane.b32.xlu1 %v1840_v53, %s1705_s8  ;;  %867 = vrot.lane.b32.xlu0 %v1822_v45, %s1705_s8  ;;  %v652_v12 = vmul.f32 %v647_v10, %v1822_v45 }
 0x116   : > { %v1191_v62 = vpop.permute.xlu1 %1190  ;;  %v759_v15 = vpop.permute.xlu0 %758 }
 0x117   : > { %v1199_v0 = vmul.f32 %v1191_v62, %v1829_v48  ;;  %v1195_v13 = vsel %vm1194_vm7, %v1191_v62, %v1193_v9  ;;  %v767_v31 = vmul.f32 %v759_v15, %v1840_v53 }
 0x118   : > { %453 = vrot.lane.b32.xlu1 %v1822_v45, %s1701_s23  ;;  %1093 = vrot.lane.b32.xlu0 %v1085_v57, %s1707_s12  ;;  %v1200_v16 = vmul.f32 %v1195_v13, %v1822_v45  ;;  %v1611_v13 = vld [vmem:[%s1952_s2 + $0x40] sm:$0xff] }
 0x11a   : > { %v757_v14 = vpop.permute.xlu1 %756 }
 0x11b   : > { %v761_v17 = vsel %vm760_vm8, %v757_v14, %v759_v15  ;;  %v765_v24 = vmul.f32 %v757_v14, %v1829_v48  ;;  %v1603_v48 = vld [vmem:[%s1952_s2 + $0x28] sm:$0xff] }
 0x11c   : > { %979 = vrot.lane.b32.xlu1 %v971_v58, %s1708_s13  ;;  %983 = vrot.lane.b32.xlu0 %v973_v59, %s1708_s13  ;;  %v766_v18 = vmul.f32 %v761_v17, %v1822_v45 }
 0x120   : > { %981 = vrot.lane.b32.xlu1 %v972_v63, %s1708_s13  ;;  %1207 = vrot.lane.b32.xlu0 %v1199_v0, %s1704_s30 }
 0x124   : > { %659 = vrot.lane.b32.xlu1 %v651_v5, %s1709_s14  ;;  %1095 = vrot.lane.b32.xlu0 %v1086_v4, %s1707_s12  ;;  %v1609_v5 = vld [vmem:[%s1953_s3 + $0x10] ss:$0 sm:$0xff] }
 0x128   : > { %1097 = vrot.lane.b32.xlu1 %v1087_v6, %s1707_s12  ;;  %663 = vrot.lane.b32.xlu0 %v653_v7, %s1709_s14  ;;  %v1610_v6 = vld [vmem:[%s1953_s3 + $0x18] ss:$0 sm:$0xff] }
 0x12c   : > { %661 = vrot.lane.b32.xlu1 %v652_v12, %s1709_s14  ;;  %1211 = vrot.lane.b32.xlu0 %v1201_v11, %s1704_s30 }
 0x130   : > { %1209 = vrot.lane.b32.xlu1 %v1200_v16, %s1704_s30  ;;  %v1599_v16 = vld [vmem:[%s1952_s2 + $0x18] sm:$0xff] }
 0x134   : > { %775 = vrot.lane.b32.xlu1 %v766_v18, %s1710_s15 }
 0x17a   : > { %v1297_v20 = vpop.permute.xlu0 %1296 }
 0x17d   : > { %v1295_v21 = vpop.permute.xlu1 %1294 }
 0x17e   : > { %v1300_v22 = vsel %vm1213_vm9, %v1295_v21, %v1297_v20  ;;  %v866_v23 = vpop.permute.xlu0 %865 }
 0x17f   : > { %1304 = vrot.lane.b32.xlu1 %v1300_v22, %s1709_s14 }
 0x182   : > { %v1299_v25 = vpop.permute.xlu1 %1298  ;;  %v452_v27 = vpop.permute.xlu0 %451 }
 0x183   : > { %v1301_v28 = vsel %vm1213_vm9, %v1297_v20, %v1299_v25  ;;  %773 = vrot.lane.b32.xlu1 %v765_v24, %s1710_s15 }
 0x184   : > { %1306 = vrot.lane.b32.xlu0 %v1301_v28, %s1709_s14 }
 0x186   : > { %v870_v32 = vpop.permute.xlu1 %869  ;;  %v868_v33 = vpop.permute.xlu0 %867 }
 0x187   : > { %v873_v34 = vsel %vm871_vm10, %v868_v33, %v870_v32  ;;  %v872_v35 = vsel %vm871_vm10, %v866_v23, %v868_v33 }
 0x188   : > { %777 = vrot.lane.b32.xlu0 %v767_v31, %s1710_s15  ;;  %879 = vmatprep.subr.mxu0 %v873_v34 }
 0x189   : > { %880 = vmatpush1.msra.mxu0 %v872_v35 }
 0x18a   : > { %v454_v8 = vpop.permute.xlu1 %453  ;;  %v1094_v38 = vpop.permute.xlu0 %1093  ;;  %1602 = vmatmul.mubr.msk.f32.vlgmr.msra.gmra.mrb[0].mxu0 %vm483_vm3, %v1601_v36 }
 0x18b   : > { %v458_v39 = vsel %vm457_vm11, %v452_v27, %v454_v8  ;;  %v459_v40 = vsel %vm457_vm11, %v454_v8, %v452_v27  ;;  %1057 = vmatprep.mubr.f32.mxu0 %v1706_v51 }
 0x18c   : > { %v468_v41 = vmul.f32 %v463_v37, %v459_v40  ;;  %v469_v42 = vmul.f32 %v467_v3, %v458_v39 }
 0x18e   : > { %561 = vmatprep.subr.mxu1 %v469_v42  ;;  %v980_v26 = vpop.permute.xlu1 %979  ;;  %v984_v44 = vpop.permute.xlu0 %983 }
 0x18f   : > { %562 = vmatpush1.msra.mxu1 %v468_v41 }
 0x190   : > { %1596 = vmatmul.mubr.msk.f32.vlgmr.msra.gmra.mrb[0].mxu1 %vm483_vm3, %v470_v43 }
 0x191   : > { %737 = vmatprep.mubr.f32.mxu1 %v1706_v51 }
 0x192   : > { %v982_v19 = vpop.permute.xlu1 %981  ;;  %v1208_v45 = vpop.permute.xlu0 %1207 }
 0x193   : > { %v986_v46 = vsel %vm985_vm12, %v980_v26, %v982_v19  ;;  %v987_v47 = vsel %vm985_vm12, %v982_v19, %v984_v44 }
 0x194   : > { %993 = vmatprep.subr.mxu0 %v987_v47 }
 0x195   : > { %994 = vmatpush1.msra.mxu0 %v986_v46 }
 0x196   : > { %v660_v49 = vpop.permute.xlu1 %659  ;;  %v1096_v50 = vpop.permute.xlu0 %1095  ;;  %1604 = vmatmul.mubr.msk.f32.vlgmr.msra.gmra.mrb[0].mxu0 %vm483_vm3, %v1603_v48 }
 0x197   : > { %1171 = vmatprep.mubr.f32.mxu0 %v1706_v51  ;;  %v1100_v55 = vsel %vm1099_vm13, %v1094_v38, %v1096_v50 }
 0x19a   : > { %v1098_v52 = vpop.permute.xlu1 %1097  ;;  %v664_v56 = vpop.permute.xlu0 %663 }
 0x19b   : > { %v1101_v53 = vsel %vm1099_vm13, %v1096_v50, %v1098_v52 }
 0x19c   : > { %1107 = vmatprep.subr.mxu0 %v1101_v53 }
 0x19d   : > { %1108 = vmatpush1.msra.mxu0 %v1100_v55 }
 0x19e   : > { %v662_v57 = vpop.permute.xlu1 %661  ;;  %1606 = vmatmul.mubr.msk.f32.vlgmr.msra.gmra.mrb[0].mxu0 %vm483_vm3, %v1605_v54  ;;  %v1212_v62 = vpop.permute.xlu0 %1211 }
 0x19f   : > { %v666_v58 = vsel %vm665_vm14, %v660_v49, %v662_v57  ;;  %v667_v59 = vsel %vm665_vm14, %v662_v57, %v664_v56  ;;  %1285 = vmatprep.mubr.f32.mxu0 %v1706_v51 }
 0x1a0   : > { %673 = vmatprep.subr.mxu1 %v667_v59 }
 0x1a1   : > { %674 = vmatpush1.msra.mxu1 %v666_v58 }
 0x1a2   : > { %v1210_v61 = vpop.permute.xlu1 %1209  ;;  %1598 = vmatmul.mubr.msk.f32.vlgmr.msra.gmra.mrb[0].mxu1 %vm483_vm3, %v1597_v60 }
 0x1a3   : > { %v1214_v63 = vsel %vm1213_vm9, %v1208_v45, %v1210_v61  ;;  %v1215_v0 = vsel %vm1213_vm9, %v1210_v61, %v1212_v62  ;;  %851 = vmatprep.mubr.f32.mxu1 %v1706_v51 }
 0x1a4   : > { %1221 = vmatprep.subr.mxu0 %v1215_v0 }
 0x1a5   : > { %1222 = vmatpush1.msra.mxu0 %v1214_v63 }
 0x1a6   : > { %1608 = vmatmul.mubr.msk.f32.vlgmr.msra.gmra.mrb[0].mxu0 %vm483_vm3, %v1607_v1  ;;  %v776_v2 = vpop.permute.xlu1 %775 }
 0x1a7   : > { %1390 = vmatprep.mubr.f32.mxu0 %v1706_v51 }
 0x1f1   : > { %v1305_v4 = vpop.permute.xlu1 %1304 }
 0x1f5   : > { %v774_v51 = vpop.permute.xlu1 %773 }
 0x1f6   : > { %v1307_v7 = vpop.permute.xlu0 %1306  ;;  %v780_v17 = vsel %vm779_vm0, %v774_v51, %v776_v2 }
 0x1f7   : > { %v1309_v9 = vsel %vm1308_vm15, %v1305_v4, %v1307_v7  ;;  %v1310_v10 = vsel %vm1308_vm15, %v1307_v7, %v1305_v4 }
 0x1f8   : > { %v1319_v11 = vmul.f32 %v1609_v5, %v1309_v9  ;;  %v1320_v12 = vmul.f32 %v1610_v6, %v1310_v10 }
 0x1fa   : > { %v778_v14 = vpop.permute.xlu0 %777  ;;  %1326 = vmatprep.subr.mxu0 %v1320_v12 }
 0x1fb   : > { %1327 = vmatpush1.msra.mxu0 %v1319_v11  ;;  %v781_v15 = vsel %vm779_vm0, %v776_v2, %v778_v14 }
 0x1fc   : > { %787 = vmatprep.subr.mxu1 %v781_v15  ;;  %1612 = vmatmul.mubr.msk.f32.vlgmr.msra.gmra.mrb[0].mxu0 %vm483_vm3, %v1611_v13 }
 0x1fd   : > { %788 = vmatpush1.msra.mxu1 %v780_v17 }
 0x1fe   : > { %1600 = vmatmul.mubr.msk.f32.vlgmr.msra.gmra.mrb[0].mxu1 %vm483_vm3, %v1599_v16 }
 0x2cf   : > { %v1392_v18 = vpop.f32.mrb[0].mxu0 }
 0x2d0   : > { %v1394_v20 = vpop.f32.mrb[1].mxu0 }
 0x2d1   : > { %v853_v21 = vpop.f32.mrb[0].mxu1 }
 0x2d2   : > { %v1618_v22 = vadd.f32 %v1392_v18, %v853_v21  ;;  %v855_v23 = vpop.f32.mrb[1].mxu1 }
 0x2d3   : > { %v1619_v24 = vadd.f32 %v1394_v20, %v855_v23 }
 0x2d4   : > { %1414 = vst [vmem:[%s384_s20] sm:$0xff] %v1618_v22 }
 0x2d5   : > { %1415 = vst [vmem:[%s384_s20 + $0x8] sm:$0xff] %v1619_v24  ;;  %v1399_v25 = vadd.f32 %v1619_v24, %v1618_v22 }
 0x2d7   : > { %1400 = vadd.xlane.f32.xlu0 %v1399_v25 }
 0x364   : > { %v1401_v27 = vpop.xlane.xlu0 %1400 }
 0x365   : > { %v1403_v28 = vmul.f32 0.00390625, %v1401_v27 }
 0x367   : > { %1406 = vst.msk [vmem:[%s392_s28] sm:$0xff] %vm646_vm6, %v1403_v28  ;;  %v1404_v29 = vsub.f32 %v1618_v22, %v1403_v28  ;;  %v1405_v30 = vsub.f32 %v1619_v24, %v1403_v28 }
 0x369   : > { %v1407_v31 = vmul.f32 %v1404_v29, %v1404_v29  ;;  %v1408_v32 = vmul.f32 %v1405_v30, %v1405_v30 }
 0x36b   : > { %v1409_v33 = vadd.f32 %v1408_v32, %v1407_v31 }
 0x36d   : > { %1410 = vadd.xlane.f32.xlu1 %v1409_v33 }
 0x3fa   : > { %v1411_v34 = vpop.xlane.xlu1 %1410 }
 0x3fb   : > { %1413 = vst.msk [vmem:[%s392_s28] sm:$0xff] %vm1412_vm1, %v1411_v34 }
 0x3fc PF: > { %s18_s26 = sadd.s32 1, %s1695_s26   ;;  %s1958_s24 = smov %s1691_s25 }
 0x3fd   : > { %p15_p5 = scmp.ge.s32.totalorder %s18_s26, 4   ;;  %s1959_s25 = smov %s1961_s27 }
 0x3ff   :  { %17 = sbr.rel (!%p15_p5) target bundleno = 2 (0x2), region = 101 }

</bundles_post_ra>
